<compile_context>
chip_gen: v5e
topology: v5e:2x2
jax: 0.10.0
libtpu: 0.0.40
codegen_flags: <defaults>
</compile_context>

<pallas_src>
import functools

import jax
import jax.numpy as jnp
import numpy as np
from jax.experimental import pallas as pl
from jax.experimental.pallas import tpu as pltpu

EPS = 1e-5
PAD = 128          # zero padding (flattened-spatial positions) on each buffer end


def scm_kernel(x_ref, w1_ref, b1_ref, w2_ref, b2_ref, w3_ref, b3_ref, w4_ref,
               b4_ref, g_ref, beta_ref, o_ref, buf1, col1, buf3, col3, *, width):
    # x_ref  : (1, 3, H*W)  f32   one NCHW sample, spatial flattened onto lanes
    # w1_ref : (C1, 27)     f32   3x3 conv,  rows = out-ch, cols = (dy,dx,cin)
    # w2_ref : (C2, C1)     f32   1x1 conv
    # w3_ref : (C2, 9*C2)   f32   3x3 conv
    # w4_ref : (C4, C2)     f32   1x1 conv
    # b*/g/beta : (C, 1)    f32
    # o_ref  : (1, C4, H*W) f32
    # buf1/buf3 : (C, PAD + H*W + PAD) f32 row-padded staging buffers
    # col1/col3 : (9*C, H*W)           f32 im2col buffers
    f32 = jnp.float32
    bf16 = jnp.bfloat16
    cin, hw = x_ref.shape[1], x_ref.shape[2]
    c2 = w3_ref.shape[0]

    def dot3(a, b):
        # bf16_3x matmul: split both f32 operands into bf16 hi + bf16 residual
        # and take the three dominant cross products with f32 accumulation.
        # Near-f32 accuracy using only bf16 MXU passes.
        a_hi = a.astype(bf16)
        a_lo = (a - a_hi.astype(f32)).astype(bf16)
        b_hi = b.astype(bf16)
        b_lo = (b - b_hi.astype(f32)).astype(bf16)
        return (jnp.dot(a_hi, b_hi, preferred_element_type=f32)
                + jnp.dot(a_hi, b_lo, preferred_element_type=f32)
                + jnp.dot(a_lo, b_hi, preferred_element_type=f32))

    # ---- lane masks killing the horizontal (dx) wrap-around of the taps ----
    lane = jax.lax.broadcasted_iota(jnp.int32, (1, hw), 1)
    wpos = lane % width
    mask_l = (wpos >= 1).astype(f32)              # valid when tap has dx-1
    mask_r = (wpos <= width - 2).astype(f32)      # valid when tap has dx+1

    def build_cols(buf, col, ch):
        # im2col: tap (dy,dx) -> rows [t*ch, (t+1)*ch) of col, t = dy*3 + dx.
        t = 0
        for oy in (-1, 0, 1):
            for ox in (-1, 0, 1):
                s = oy * width + ox
                patch = buf[:, PAD + s: PAD + s + hw]      # static lane-offset slice
                if ox == -1:
                    patch = patch * mask_l
                elif ox == 1:
                    patch = patch * mask_r
                col[t * ch:(t + 1) * ch, :] = patch
                t += 1

    # ---- stage input with zeroed 128-lane ends (handles the dy=+-1 padding) ----
    zpad1 = jnp.zeros((cin, PAD), f32)
    buf1[:, 0:PAD] = zpad1
    buf1[:, PAD + hw:PAD + hw + PAD] = zpad1
    buf1[:, PAD:PAD + hw] = x_ref[0]

    # ---- conv1: 3x3, 3 -> C1, pad=1, bias, ReLU (single im2col matmul) ----
    build_cols(buf1, col1, cin)
    y1 = jnp.maximum(dot3(w1_ref[...], col1[...]) + b1_ref[...], 0.0)   # (C1, HW)

    # ---- conv2: 1x1, C1 -> C2, bias, ReLU ----
    y2 = jnp.maximum(dot3(w2_ref[...], y1) + b2_ref[...], 0.0)          # (C2, HW)

    # ---- conv3: 3x3, C2 -> C2, pad=1, bias, ReLU (single im2col matmul) ----
    zpad3 = jnp.zeros((c2, PAD), f32)
    buf3[:, 0:PAD] = zpad3
    buf3[:, PAD + hw:PAD + hw + PAD] = zpad3
    buf3[:, PAD:PAD + hw] = y2
    build_cols(buf3, col3, c2)
    y3 = jnp.maximum(dot3(w3_ref[...], col3[...]) + b3_ref[...], 0.0)   # (C2, HW)

    # ---- conv4: 1x1, C2 -> C4, bias, no ReLU ----
    y4 = dot3(w4_ref[...], y3) + b4_ref[...]                            # (C4, HW)

    # ---- InstanceNorm2d(affine): one-pass sum / sum-of-squares over spatial ----
    inv_n = 1.0 / hw
    mean = jnp.sum(y4, axis=1, keepdims=True) * inv_n       # (C4, 1)
    ex2 = jnp.sum(y4 * y4, axis=1, keepdims=True) * inv_n   # (C4, 1)
    var = ex2 - mean * mean                                  # biased, like PyTorch
    scale = jax.lax.rsqrt(var + EPS) * g_ref[...]
    shift = beta_ref[...] - mean * scale
    o_ref[0] = y4 * scale + shift                            # lane-dense (C4, HW) store


def scm_forward(x_nchw, params):
    """x_nchw: (N, 3, H, W) float32  ->  (N, out_plane, H, W) float32."""
    w1, b1, w2, b2, w3, b3, w4, b4, gamma, beta = params
    N, cin, H, W = x_nchw.shape
    assert cin == 3 and W + 1 <= PAD
    HW = H * W
    C1 = w1.shape[-1]
    C2 = w3.shape[-1]
    C4 = w4.shape[-1]

    # NCHW -> (N, C, H*W) is a free (contiguous) reshape: no wrapper transpose.
    x2 = x_nchw.reshape(N, cin, HW).astype(jnp.float32)

    # Weights in "transposed" (Cout, K) form, kept f32 (split to bf16 hi/lo in-kernel).
    w1t = w1.reshape(9 * cin, C1).T.astype(jnp.float32)      # (C1, 27)
    w2t = w2.T.astype(jnp.float32)                           # (C2, C1)
    w3t = w3.reshape(9 * C2, C2).T.astype(jnp.float32)       # (C2, 9*C2)
    w4t = w4.T.astype(jnp.float32)                           # (C4, C2)
    b1c = b1.reshape(C1, 1).astype(jnp.float32)
    b2c = b2.reshape(C2, 1).astype(jnp.float32)
    b3c = b3.reshape(C2, 1).astype(jnp.float32)
    b4c = b4.reshape(C4, 1).astype(jnp.float32)
    gc = gamma.reshape(C4, 1).astype(jnp.float32)
    bc = beta.reshape(C4, 1).astype(jnp.float32)

    kernel = functools.partial(scm_kernel, width=W)

    out = pl.pallas_call(
        kernel,
        out_shape=jax.ShapeDtypeStruct((N, C4, HW), jnp.float32),
        grid_spec=pltpu.PrefetchScalarGridSpec(
            num_scalar_prefetch=0,
            grid=(N,),
            in_specs=[
                pl.BlockSpec((1, cin, HW), lambda n: (n, 0, 0)),
                pl.BlockSpec((C1, 9 * cin), lambda n: (0, 0)),
                pl.BlockSpec((C1, 1), lambda n: (0, 0)),
                pl.BlockSpec((C2, C1), lambda n: (0, 0)),
                pl.BlockSpec((C2, 1), lambda n: (0, 0)),
                pl.BlockSpec((C2, 9 * C2), lambda n: (0, 0)),
                pl.BlockSpec((C2, 1), lambda n: (0, 0)),
                pl.BlockSpec((C4, C2), lambda n: (0, 0)),
                pl.BlockSpec((C4, 1), lambda n: (0, 0)),
                pl.BlockSpec((C4, 1), lambda n: (0, 0)),
                pl.BlockSpec((C4, 1), lambda n: (0, 0)),
            ],
            out_specs=pl.BlockSpec((1, C4, HW), lambda n: (n, 0, 0)),
            scratch_shapes=[
                pltpu.VMEM((cin, HW + 2 * PAD), jnp.float32),   # buf1
                pltpu.VMEM((9 * cin, HW), jnp.float32),         # col1
                pltpu.VMEM((C2, HW + 2 * PAD), jnp.float32),    # buf3
                pltpu.VMEM((9 * C2, HW), jnp.float32),          # col3
            ],
        ),
        compiler_params=pltpu.CompilerParams(
            dimension_semantics=("parallel",)),
    )(x2, w1t, b1c, w2t, b2c, w3t, b3c, w4t, b4c, gc, bc)

    # (N, C4, H*W) -> (N, C4, H, W): free reshape, already NCHW.
    return out.reshape(N, C4, H, W)


def scm_reference(x_nchw, params):
    """Plain-JAX reference (lax.conv, HIGHEST precision) for validation."""
    w1, b1, w2, b2, w3, b3, w4, b4, gamma, beta = params
    x = jnp.transpose(x_nchw, (0, 2, 3, 1)).astype(jnp.float32)

    def conv(x, w, b):
        y = jax.lax.conv_general_dilated(
            x, w, window_strides=(1, 1), padding="SAME",
            dimension_numbers=("NHWC", "HWIO", "NHWC"),
            precision=jax.lax.Precision.HIGHEST)
        return y + b

    y = jax.nn.relu(conv(x, w1, b1))
    y = jax.nn.relu(conv(y, w2.reshape(1, 1, *w2.shape), b2))
    y = jax.nn.relu(conv(y, w3, b3))
    y = conv(y, w4.reshape(1, 1, *w4.shape), b4)
    mean = jnp.mean(y, axis=(1, 2), keepdims=True)
    var = jnp.var(y, axis=(1, 2), keepdims=True)             # biased variance
    y = (y - mean) * jax.lax.rsqrt(var + EPS) * gamma + beta
    return jnp.transpose(y, (0, 3, 1, 2))


def init_params(key, out_plane):
    c1, c2, c4 = out_plane // 4, out_plane // 2, out_plane
    ks = jax.random.split(key, 10)
    # Conv weights stored HWIO (3x3) or (Cin, Cout) for 1x1 convs.
    w1 = 0.3 * jax.random.normal(ks[0], (3, 3, 3, c1), jnp.float32)
    b1 = 0.1 * jax.random.normal(ks[1], (c1,), jnp.float32)
    w2 = 0.3 * jax.random.normal(ks[2], (c1, c2), jnp.float32)
    b2 = 0.1 * jax.random.normal(ks[3], (c2,), jnp.float32)
    w3 = 0.3 * jax.random.normal(ks[4], (3, 3, c2, c2), jnp.float32)
    b3 = 0.1 * jax.random.normal(ks[5], (c2,), jnp.float32)
    w4 = 0.3 * jax.random.normal(ks[6], (c2, c4), jnp.float32)
    b4 = 0.1 * jax.random.normal(ks[7], (c4,), jnp.float32)
    gamma = 1.0 + 0.1 * jax.random.normal(ks[8], (c4,), jnp.float32)
    beta = 0.1 * jax.random.normal(ks[9], (c4,), jnp.float32)
    return (w1, b1, w2, b2, w3, b3, w4, b4, gamma, beta)


if __name__ == "__main__":
    key = jax.random.PRNGKey(0)
    kx, kp = jax.random.split(key)

    N, H, W = 2, 16, 16
    OUT_PLANE = 32
    x = jax.random.normal(kx, (N, 3, H, W), jnp.float32)    # NCHW, like PyTorch
    params = init_params(kp, OUT_PLANE)

    out = jax.jit(scm_forward)(x, params)
    out = jax.block_until_ready(out)

    ref = jax.block_until_ready(scm_reference(x, params))
    assert out.shape == (N, OUT_PLANE, H, W), out.shape
    # bf16_3x MXU matmuls (f32 accumulation) give ~1e-4 end-to-end error.
    np.testing.assert_allclose(np.asarray(out), np.asarray(ref),
                               atol=2e-3, rtol=2e-3)

    print("KERNEL_OK")
</pallas_src>

<mosaic_0001>
module attributes {stable_mosaic.version = 11 : i64} {
  func.func @scm_kernel(%arg0: i32, %arg1: memref<1x3x256xf32, #tpu.memory_space<vmem>>, %arg2: memref<8x27xf32, #tpu.memory_space<vmem>>, %arg3: memref<8x1xf32, #tpu.memory_space<vmem>>, %arg4: memref<16x8xf32, #tpu.memory_space<vmem>>, %arg5: memref<16x1xf32, #tpu.memory_space<vmem>>, %arg6: memref<16x144xf32, #tpu.memory_space<vmem>>, %arg7: memref<16x1xf32, #tpu.memory_space<vmem>>, %arg8: memref<32x16xf32, #tpu.memory_space<vmem>>, %arg9: memref<32x1xf32, #tpu.memory_space<vmem>>, %arg10: memref<32x1xf32, #tpu.memory_space<vmem>>, %arg11: memref<32x1xf32, #tpu.memory_space<vmem>>, %arg12: memref<1x32x256xf32, #tpu.memory_space<vmem>>, %arg13: memref<3x512xf32, #tpu.memory_space<vmem>>, %arg14: memref<27x256xf32, #tpu.memory_space<vmem>>, %arg15: memref<16x512xf32, #tpu.memory_space<vmem>>, %arg16: memref<144x256xf32, #tpu.memory_space<vmem>>) attributes {dimension_semantics = [#tpu.dimension_semantics<parallel>], iteration_bounds = array<i64: 2>, scalar_prefetch = 0 : i64, scratch_operands = 4 : i64, tpu.core_type = #tpu.core_type<tc>, window_params = [{transform_indices = @transform_0, window_bounds = array<i64: 1, 3, 256>}, {pipeline_mode = #tpu.pipeline_mode<synchronous>, transform_indices = @transform_1, window_bounds = array<i64: 8, 27>}, {pipeline_mode = #tpu.pipeline_mode<synchronous>, transform_indices = @transform_2, window_bounds = array<i64: 8, 1>}, {pipeline_mode = #tpu.pipeline_mode<synchronous>, transform_indices = @transform_3, window_bounds = array<i64: 16, 8>}, {pipeline_mode = #tpu.pipeline_mode<synchronous>, transform_indices = @transform_4, window_bounds = array<i64: 16, 1>}, {pipeline_mode = #tpu.pipeline_mode<synchronous>, transform_indices = @transform_5, window_bounds = array<i64: 16, 144>}, {pipeline_mode = #tpu.pipeline_mode<synchronous>, transform_indices = @transform_6, window_bounds = array<i64: 16, 1>}, {pipeline_mode = #tpu.pipeline_mode<synchronous>, transform_indices = @transform_7, window_bounds = array<i64: 32, 16>}, {pipeline_mode = #tpu.pipeline_mode<synchronous>, transform_indices = @transform_8, window_bounds = array<i64: 32, 1>}, {pipeline_mode = #tpu.pipeline_mode<synchronous>, transform_indices = @transform_9, window_bounds = array<i64: 32, 1>}, {pipeline_mode = #tpu.pipeline_mode<synchronous>, transform_indices = @transform_10, window_bounds = array<i64: 32, 1>}, {transform_indices = @transform_11, window_bounds = array<i64: 1, 32, 256>}]} {
    %0 = tpu.iota {dimensions = array<i32: 1>} : vector<1x256xi32>
    %c16_i32 = arith.constant 16 : i32
    %c0_i32 = arith.constant 0 : i32
    %1 = arith.cmpi eq, %c16_i32, %c0_i32 : i32
    %c1_i32 = arith.constant 1 : i32
    %2 = arith.select %1, %c1_i32, %c16_i32 : i32
    %3 = vector.broadcast %2 : i32 to vector<1x256xi32>
    %4 = arith.remsi %0, %3 : vector<1x256xi32>
    %c0_i32_0 = arith.constant 0 : i32
    %5 = vector.broadcast %c0_i32_0 : i32 to vector<1x256xi32>
    %6 = arith.cmpi ne, %4, %5 : vector<1x256xi32>
    %c0_i32_1 = arith.constant 0 : i32
    %7 = vector.broadcast %c0_i32_1 : i32 to vector<1x256xi32>
    %8 = arith.cmpi slt, %4, %7 : vector<1x256xi32>
    %c0_i32_2 = arith.constant 0 : i32
    %9 = arith.cmpi slt, %2, %c0_i32_2 : i32
    %10 = vector.broadcast %9 : i1 to vector<1x256xi1>
    %11 = vector.broadcast %10 : vector<1x256xi1> to vector<1x256xi1>
    %12 = arith.xori %8, %11 : vector<1x256xi1>
    %13 = arith.andi %12, %6 : vector<1x256xi1>
    %14 = vector.broadcast %2 : i32 to vector<1x256xi32>
    %15 = arith.addi %4, %14 : vector<1x256xi32>
    %16 = arith.select %13, %15, %4 : vector<1x256xi1>, vector<1x256xi32>
    %c1_i32_3 = arith.constant 1 : i32
    %17 = vector.broadcast %c1_i32_3 : i32 to vector<1x256xi32>
    %18 = arith.cmpi sge, %16, %17 : vector<1x256xi32>
    %19 = arith.extui %18 : vector<1x256xi1> to vector<1x256xi32>
    %20 = arith.sitofp %19 : vector<1x256xi32> to vector<1x256xf32>
    %c14_i32 = arith.constant 14 : i32
    %21 = vector.broadcast %c14_i32 : i32 to vector<1x256xi32>
    %22 = arith.cmpi sle, %16, %21 : vector<1x256xi32>
    %23 = arith.extui %22 : vector<1x256xi1> to vector<1x256xi32>
    %24 = arith.sitofp %23 : vector<1x256xi32> to vector<1x256xf32>
    %cst = arith.constant 0.000000e+00 : f32
    %25 = vector.broadcast %cst : f32 to vector<3x128xf32>
    %c0 = arith.constant 0 : index
    %c0_4 = arith.constant 0 : index
    %26 = vector.load %arg13[%c0, %c0_4] : memref<3x512xf32, #tpu.memory_space<vmem>>, vector<3x128xf32>
    tpu.vector_store %arg13[%c0, %c0_4], %25 {strides = array<i32>} : memref<3x512xf32, #tpu.memory_space<vmem>>, vector<3x128xf32>,
    %c0_5 = arith.constant 0 : index
    %c384 = arith.constant 384 : index
    %27 = vector.load %arg13[%c0_5, %c384] : memref<3x512xf32, #tpu.memory_space<vmem>>, vector<3x128xf32>
    tpu.vector_store %arg13[%c0_5, %c384], %25 {strides = array<i32>} : memref<3x512xf32, #tpu.memory_space<vmem>>, vector<3x128xf32>,
    %c0_6 = arith.constant 0 : index
    %c0_7 = arith.constant 0 : index
    %c0_8 = arith.constant 0 : index
    %28 = vector.load %arg1[%c0_6, %c0_7, %c0_8] : memref<1x3x256xf32, #tpu.memory_space<vmem>>, vector<1x3x256xf32>
    %29 = vector.shape_cast %28 : vector<1x3x256xf32> to vector<3x256xf32>
    %c0_9 = arith.constant 0 : index
    %c128 = arith.constant 128 : index
    %30 = vector.load %arg13[%c0_9, %c128] : memref<3x512xf32, #tpu.memory_space<vmem>>, vector<3x256xf32>
    tpu.vector_store %arg13[%c0_9, %c128], %29 {strides = array<i32>} : memref<3x512xf32, #tpu.memory_space<vmem>>, vector<3x256xf32>,
    %c0_10 = arith.constant 0 : index
    %c111 = arith.constant 111 : index
    %31 = vector.load %arg13[%c0_10, %c111] : memref<3x512xf32, #tpu.memory_space<vmem>>, vector<3x256xf32>
    %32 = vector.broadcast %20 : vector<1x256xf32> to vector<3x256xf32>
    %33 = arith.mulf %31, %32 : vector<3x256xf32>
    %c0_11 = arith.constant 0 : index
    %c0_12 = arith.constant 0 : index
    %34 = vector.load %arg14[%c0_11, %c0_12] : memref<27x256xf32, #tpu.memory_space<vmem>>, vector<3x256xf32>
    tpu.vector_store %arg14[%c0_11, %c0_12], %33 {strides = array<i32>} : memref<27x256xf32, #tpu.memory_space<vmem>>, vector<3x256xf32>,
    %c0_13 = arith.constant 0 : index
    %c112 = arith.constant 112 : index
    %35 = vector.load %arg13[%c0_13, %c112] : memref<3x512xf32, #tpu.memory_space<vmem>>, vector<3x256xf32>
    %c3 = arith.constant 3 : index
    %c0_14 = arith.constant 0 : index
    %36 = vector.load %arg14[%c3, %c0_14] : memref<27x256xf32, #tpu.memory_space<vmem>>, vector<3x256xf32>
    tpu.vector_store %arg14[%c3, %c0_14], %35 {strides = array<i32>} : memref<27x256xf32, #tpu.memory_space<vmem>>, vector<3x256xf32>,
    %c0_15 = arith.constant 0 : index
    %c113 = arith.constant 113 : index
    %37 = vector.load %arg13[%c0_15, %c113] : memref<3x512xf32, #tpu.memory_space<vmem>>, vector<3x256xf32>
    %38 = vector.broadcast %24 : vector<1x256xf32> to vector<3x256xf32>
    %39 = arith.mulf %37, %38 : vector<3x256xf32>
    %c6 = arith.constant 6 : index
    %c0_16 = arith.constant 0 : index
    %40 = vector.load %arg14[%c6, %c0_16] : memref<27x256xf32, #tpu.memory_space<vmem>>, vector<3x256xf32>
    tpu.vector_store %arg14[%c6, %c0_16], %39 {strides = array<i32>} : memref<27x256xf32, #tpu.memory_space<vmem>>, vector<3x256xf32>,
    %c0_17 = arith.constant 0 : index
    %c127 = arith.constant 127 : index
    %41 = vector.load %arg13[%c0_17, %c127] : memref<3x512xf32, #tpu.memory_space<vmem>>, vector<3x256xf32>
    %42 = vector.broadcast %20 : vector<1x256xf32> to vector<3x256xf32>
    %43 = arith.mulf %41, %42 : vector<3x256xf32>
    %c9 = arith.constant 9 : index
    %c0_18 = arith.constant 0 : index
    %44 = vector.load %arg14[%c9, %c0_18] : memref<27x256xf32, #tpu.memory_space<vmem>>, vector<3x256xf32>
    tpu.vector_store %arg14[%c9, %c0_18], %43 {strides = array<i32>} : memref<27x256xf32, #tpu.memory_space<vmem>>, vector<3x256xf32>,
    %c0_19 = arith.constant 0 : index
    %c128_20 = arith.constant 128 : index
    %45 = vector.load %arg13[%c0_19, %c128_20] : memref<3x512xf32, #tpu.memory_space<vmem>>, vector<3x256xf32>
    %c12 = arith.constant 12 : index
    %c0_21 = arith.constant 0 : index
    %46 = vector.load %arg14[%c12, %c0_21] : memref<27x256xf32, #tpu.memory_space<vmem>>, vector<3x256xf32>
    tpu.vector_store %arg14[%c12, %c0_21], %45 {strides = array<i32>} : memref<27x256xf32, #tpu.memory_space<vmem>>, vector<3x256xf32>,
    %c0_22 = arith.constant 0 : index
    %c129 = arith.constant 129 : index
    %47 = vector.load %arg13[%c0_22, %c129] : memref<3x512xf32, #tpu.memory_space<vmem>>, vector<3x256xf32>
    %48 = vector.broadcast %24 : vector<1x256xf32> to vector<3x256xf32>
    %49 = arith.mulf %47, %48 : vector<3x256xf32>
    %c15 = arith.constant 15 : index
    %c0_23 = arith.constant 0 : index
    %50 = vector.load %arg14[%c15, %c0_23] : memref<27x256xf32, #tpu.memory_space<vmem>>, vector<3x256xf32>
    tpu.vector_store %arg14[%c15, %c0_23], %49 {strides = array<i32>} : memref<27x256xf32, #tpu.memory_space<vmem>>, vector<3x256xf32>,
    %c0_24 = arith.constant 0 : index
    %c143 = arith.constant 143 : index
    %51 = vector.load %arg13[%c0_24, %c143] : memref<3x512xf32, #tpu.memory_space<vmem>>, vector<3x256xf32>
    %52 = vector.broadcast %20 : vector<1x256xf32> to vector<3x256xf32>
    %53 = arith.mulf %51, %52 : vector<3x256xf32>
    %c18 = arith.constant 18 : index
    %c0_25 = arith.constant 0 : index
    %54 = vector.load %arg14[%c18, %c0_25] : memref<27x256xf32, #tpu.memory_space<vmem>>, vector<3x256xf32>
    tpu.vector_store %arg14[%c18, %c0_25], %53 {strides = array<i32>} : memref<27x256xf32, #tpu.memory_space<vmem>>, vector<3x256xf32>,
    %c0_26 = arith.constant 0 : index
    %c144 = arith.constant 144 : index
    %55 = vector.load %arg13[%c0_26, %c144] : memref<3x512xf32, #tpu.memory_space<vmem>>, vector<3x256xf32>
    %c21 = arith.constant 21 : index
    %c0_27 = arith.constant 0 : index
    %56 = vector.load %arg14[%c21, %c0_27] : memref<27x256xf32, #tpu.memory_space<vmem>>, vector<3x256xf32>
    tpu.vector_store %arg14[%c21, %c0_27], %55 {strides = array<i32>} : memref<27x256xf32, #tpu.memory_space<vmem>>, vector<3x256xf32>,
    %c0_28 = arith.constant 0 : index
    %c145 = arith.constant 145 : index
    %57 = vector.load %arg13[%c0_28, %c145] : memref<3x512xf32, #tpu.memory_space<vmem>>, vector<3x256xf32>
    %58 = vector.broadcast %24 : vector<1x256xf32> to vector<3x256xf32>
    %59 = arith.mulf %57, %58 : vector<3x256xf32>
    %c24 = arith.constant 24 : index
    %c0_29 = arith.constant 0 : index
    %60 = vector.load %arg14[%c24, %c0_29] : memref<27x256xf32, #tpu.memory_space<vmem>>, vector<3x256xf32>
    tpu.vector_store %arg14[%c24, %c0_29], %59 {strides = array<i32>} : memref<27x256xf32, #tpu.memory_space<vmem>>, vector<3x256xf32>,
    %c0_30 = arith.constant 0 : index
    %c0_31 = arith.constant 0 : index
    %61 = vector.load %arg2[%c0_30, %c0_31] : memref<8x27xf32, #tpu.memory_space<vmem>>, vector<8x27xf32>
    %c0_32 = arith.constant 0 : index
    %c0_33 = arith.constant 0 : index
    %62 = vector.load %arg14[%c0_32, %c0_33] : memref<27x256xf32, #tpu.memory_space<vmem>>, vector<27x256xf32>
    %63 = arith.truncf %61 : vector<8x27xf32> to vector<8x27xbf16>
    %64 = arith.extf %63 : vector<8x27xbf16> to vector<8x27xf32>
    %65 = arith.subf %61, %64 : vector<8x27xf32>
    %66 = arith.truncf %65 : vector<8x27xf32> to vector<8x27xbf16>
    %67 = arith.truncf %62 : vector<27x256xf32> to vector<27x256xbf16>
    %68 = arith.extf %67 : vector<27x256xbf16> to vector<27x256xf32>
    %69 = arith.subf %62, %68 : vector<27x256xf32>
    %70 = arith.truncf %69 : vector<27x256xf32> to vector<27x256xbf16>
    %cst_34 = arith.constant dense<0.000000e+00> : vector<8x256xf32>
    %71 = tpu.matmul %63, %67, %cst_34 {dimension_numbers = #tpu.dot_dimension_numbers<[1], [0], [0], [1], [0, 0, 1, 1], [], []>} : vector<8x27xbf16>, vector<27x256xbf16>, vector<8x256xf32> -> vector<8x256xf32>
    %cst_35 = arith.constant dense<0.000000e+00> : vector<8x256xf32>
    %72 = tpu.matmul %63, %70, %cst_35 {dimension_numbers = #tpu.dot_dimension_numbers<[1], [0], [0], [1], [0, 0, 1, 1], [], []>} : vector<8x27xbf16>, vector<27x256xbf16>, vector<8x256xf32> -> vector<8x256xf32>
    %73 = arith.addf %71, %72 : vector<8x256xf32>
    %cst_36 = arith.constant dense<0.000000e+00> : vector<8x256xf32>
    %74 = tpu.matmul %66, %67, %cst_36 {dimension_numbers = #tpu.dot_dimension_numbers<[1], [0], [0], [1], [0, 0, 1, 1], [], []>} : vector<8x27xbf16>, vector<27x256xbf16>, vector<8x256xf32> -> vector<8x256xf32>
    %75 = arith.addf %73, %74 : vector<8x256xf32>
    %c0_37 = arith.constant 0 : index
    %c0_38 = arith.constant 0 : index
    %76 = vector.load %arg3[%c0_37, %c0_38] : memref<8x1xf32, #tpu.memory_space<vmem>>, vector<8x1xf32>
    %77 = vector.broadcast %76 : vector<8x1xf32> to vector<8x256xf32>
    %78 = arith.addf %75, %77 : vector<8x256xf32>
    %cst_39 = arith.constant 0.000000e+00 : f32
    %79 = vector.broadcast %cst_39 : f32 to vector<8x256xf32>
    %80 = arith.maximumf %78, %79 : vector<8x256xf32>
    %c0_40 = arith.constant 0 : index
    %c0_41 = arith.constant 0 : index
    %81 = vector.load %arg4[%c0_40, %c0_41] : memref<16x8xf32, #tpu.memory_space<vmem>>, vector<16x8xf32>
    %82 = arith.truncf %81 : vector<16x8xf32> to vector<16x8xbf16>
    %83 = arith.extf %82 : vector<16x8xbf16> to vector<16x8xf32>
    %84 = arith.subf %81, %83 : vector<16x8xf32>
    %85 = arith.truncf %84 : vector<16x8xf32> to vector<16x8xbf16>
    %86 = arith.truncf %80 : vector<8x256xf32> to vector<8x256xbf16>
    %87 = arith.extf %86 : vector<8x256xbf16> to vector<8x256xf32>
    %88 = arith.subf %80, %87 : vector<8x256xf32>
    %89 = arith.truncf %88 : vector<8x256xf32> to vector<8x256xbf16>
    %cst_42 = arith.constant dense<0.000000e+00> : vector<16x256xf32>
    %90 = tpu.matmul %82, %86, %cst_42 {dimension_numbers = #tpu.dot_dimension_numbers<[1], [0], [0], [1], [0, 0, 1, 1], [], []>} : vector<16x8xbf16>, vector<8x256xbf16>, vector<16x256xf32> -> vector<16x256xf32>
    %cst_43 = arith.constant dense<0.000000e+00> : vector<16x256xf32>
    %91 = tpu.matmul %82, %89, %cst_43 {dimension_numbers = #tpu.dot_dimension_numbers<[1], [0], [0], [1], [0, 0, 1, 1], [], []>} : vector<16x8xbf16>, vector<8x256xbf16>, vector<16x256xf32> -> vector<16x256xf32>
    %92 = arith.addf %90, %91 : vector<16x256xf32>
    %cst_44 = arith.constant dense<0.000000e+00> : vector<16x256xf32>
    %93 = tpu.matmul %85, %86, %cst_44 {dimension_numbers = #tpu.dot_dimension_numbers<[1], [0], [0], [1], [0, 0, 1, 1], [], []>} : vector<16x8xbf16>, vector<8x256xbf16>, vector<16x256xf32> -> vector<16x256xf32>
    %94 = arith.addf %92, %93 : vector<16x256xf32>
    %c0_45 = arith.constant 0 : index
    %c0_46 = arith.constant 0 : index
    %95 = vector.load %arg5[%c0_45, %c0_46] : memref<16x1xf32, #tpu.memory_space<vmem>>, vector<16x1xf32>
    %96 = vector.broadcast %95 : vector<16x1xf32> to vector<16x256xf32>
    %97 = arith.addf %94, %96 : vector<16x256xf32>
    %cst_47 = arith.constant 0.000000e+00 : f32
    %98 = vector.broadcast %cst_47 : f32 to vector<16x256xf32>
    %99 = arith.maximumf %97, %98 : vector<16x256xf32>
    %cst_48 = arith.constant 0.000000e+00 : f32
    %100 = vector.broadcast %cst_48 : f32 to vector<16x128xf32>
    %c0_49 = arith.constant 0 : index
    %c0_50 = arith.constant 0 : index
    %101 = vector.load %arg15[%c0_49, %c0_50] : memref<16x512xf32, #tpu.memory_space<vmem>>, vector<16x128xf32>
    tpu.vector_store %arg15[%c0_49, %c0_50], %100 {strides = array<i32>} : memref<16x512xf32, #tpu.memory_space<vmem>>, vector<16x128xf32>,
    %c0_51 = arith.constant 0 : index
    %c384_52 = arith.constant 384 : index
    %102 = vector.load %arg15[%c0_51, %c384_52] : memref<16x512xf32, #tpu.memory_space<vmem>>, vector<16x128xf32>
    tpu.vector_store %arg15[%c0_51, %c384_52], %100 {strides = array<i32>} : memref<16x512xf32, #tpu.memory_space<vmem>>, vector<16x128xf32>,
    %c0_53 = arith.constant 0 : index
    %c128_54 = arith.constant 128 : index
    %103 = vector.load %arg15[%c0_53, %c128_54] : memref<16x512xf32, #tpu.memory_space<vmem>>, vector<16x256xf32>
    tpu.vector_store %arg15[%c0_53, %c128_54], %99 {strides = array<i32>} : memref<16x512xf32, #tpu.memory_space<vmem>>, vector<16x256xf32>,
    %c0_55 = arith.constant 0 : index
    %c111_56 = arith.constant 111 : index
    %104 = vector.load %arg15[%c0_55, %c111_56] : memref<16x512xf32, #tpu.memory_space<vmem>>, vector<16x256xf32>
    %105 = vector.broadcast %20 : vector<1x256xf32> to vector<16x256xf32>
    %106 = arith.mulf %104, %105 : vector<16x256xf32>
    %c0_57 = arith.constant 0 : index
    %c0_58 = arith.constant 0 : index
    %107 = vector.load %arg16[%c0_57, %c0_58] : memref<144x256xf32, #tpu.memory_space<vmem>>, vector<16x256xf32>
    tpu.vector_store %arg16[%c0_57, %c0_58], %106 {strides = array<i32>} : memref<144x256xf32, #tpu.memory_space<vmem>>, vector<16x256xf32>,
    %c0_59 = arith.constant 0 : index
    %c112_60 = arith.constant 112 : index
    %108 = vector.load %arg15[%c0_59, %c112_60] : memref<16x512xf32, #tpu.memory_space<vmem>>, vector<16x256xf32>
    %c16 = arith.constant 16 : index
    %c0_61 = arith.constant 0 : index
    %109 = vector.load %arg16[%c16, %c0_61] : memref<144x256xf32, #tpu.memory_space<vmem>>, vector<16x256xf32>
    tpu.vector_store %arg16[%c16, %c0_61], %108 {strides = array<i32>} : memref<144x256xf32, #tpu.memory_space<vmem>>, vector<16x256xf32>,
    %c0_62 = arith.constant 0 : index
    %c113_63 = arith.constant 113 : index
    %110 = vector.load %arg15[%c0_62, %c113_63] : memref<16x512xf32, #tpu.memory_space<vmem>>, vector<16x256xf32>
    %111 = vector.broadcast %24 : vector<1x256xf32> to vector<16x256xf32>
    %112 = arith.mulf %110, %111 : vector<16x256xf32>
    %c32 = arith.constant 32 : index
    %c0_64 = arith.constant 0 : index
    %113 = vector.load %arg16[%c32, %c0_64] : memref<144x256xf32, #tpu.memory_space<vmem>>, vector<16x256xf32>
    tpu.vector_store %arg16[%c32, %c0_64], %112 {strides = array<i32>} : memref<144x256xf32, #tpu.memory_space<vmem>>, vector<16x256xf32>,
    %c0_65 = arith.constant 0 : index
    %c127_66 = arith.constant 127 : index
    %114 = vector.load %arg15[%c0_65, %c127_66] : memref<16x512xf32, #tpu.memory_space<vmem>>, vector<16x256xf32>
    %115 = vector.broadcast %20 : vector<1x256xf32> to vector<16x256xf32>
    %116 = arith.mulf %114, %115 : vector<16x256xf32>
    %c48 = arith.constant 48 : index
    %c0_67 = arith.constant 0 : index
    %117 = vector.load %arg16[%c48, %c0_67] : memref<144x256xf32, #tpu.memory_space<vmem>>, vector<16x256xf32>
    tpu.vector_store %arg16[%c48, %c0_67], %116 {strides = array<i32>} : memref<144x256xf32, #tpu.memory_space<vmem>>, vector<16x256xf32>,
    %c0_68 = arith.constant 0 : index
    %c128_69 = arith.constant 128 : index
    %118 = vector.load %arg15[%c0_68, %c128_69] : memref<16x512xf32, #tpu.memory_space<vmem>>, vector<16x256xf32>
    %c64 = arith.constant 64 : index
    %c0_70 = arith.constant 0 : index
    %119 = vector.load %arg16[%c64, %c0_70] : memref<144x256xf32, #tpu.memory_space<vmem>>, vector<16x256xf32>
    tpu.vector_store %arg16[%c64, %c0_70], %118 {strides = array<i32>} : memref<144x256xf32, #tpu.memory_space<vmem>>, vector<16x256xf32>,
    %c0_71 = arith.constant 0 : index
    %c129_72 = arith.constant 129 : index
    %120 = vector.load %arg15[%c0_71, %c129_72] : memref<16x512xf32, #tpu.memory_space<vmem>>, vector<16x256xf32>
    %121 = vector.broadcast %24 : vector<1x256xf32> to vector<16x256xf32>
    %122 = arith.mulf %120, %121 : vector<16x256xf32>
    %c80 = arith.constant 80 : index
    %c0_73 = arith.constant 0 : index
    %123 = vector.load %arg16[%c80, %c0_73] : memref<144x256xf32, #tpu.memory_space<vmem>>, vector<16x256xf32>
    tpu.vector_store %arg16[%c80, %c0_73], %122 {strides = array<i32>} : memref<144x256xf32, #tpu.memory_space<vmem>>, vector<16x256xf32>,
    %c0_74 = arith.constant 0 : index
    %c143_75 = arith.constant 143 : index
    %124 = vector.load %arg15[%c0_74, %c143_75] : memref<16x512xf32, #tpu.memory_space<vmem>>, vector<16x256xf32>
    %125 = vector.broadcast %20 : vector<1x256xf32> to vector<16x256xf32>
    %126 = arith.mulf %124, %125 : vector<16x256xf32>
    %c96 = arith.constant 96 : index
    %c0_76 = arith.constant 0 : index
    %127 = vector.load %arg16[%c96, %c0_76] : memref<144x256xf32, #tpu.memory_space<vmem>>, vector<16x256xf32>
    tpu.vector_store %arg16[%c96, %c0_76], %126 {strides = array<i32>} : memref<144x256xf32, #tpu.memory_space<vmem>>, vector<16x256xf32>,
    %c0_77 = arith.constant 0 : index
    %c144_78 = arith.constant 144 : index
    %128 = vector.load %arg15[%c0_77, %c144_78] : memref<16x512xf32, #tpu.memory_space<vmem>>, vector<16x256xf32>
    %c112_79 = arith.constant 112 : index
    %c0_80 = arith.constant 0 : index
    %129 = vector.load %arg16[%c112_79, %c0_80] : memref<144x256xf32, #tpu.memory_space<vmem>>, vector<16x256xf32>
    tpu.vector_store %arg16[%c112_79, %c0_80], %128 {strides = array<i32>} : memref<144x256xf32, #tpu.memory_space<vmem>>, vector<16x256xf32>,
    %c0_81 = arith.constant 0 : index
    %c145_82 = arith.constant 145 : index
    %130 = vector.load %arg15[%c0_81, %c145_82] : memref<16x512xf32, #tpu.memory_space<vmem>>, vector<16x256xf32>
    %131 = vector.broadcast %24 : vector<1x256xf32> to vector<16x256xf32>
    %132 = arith.mulf %130, %131 : vector<16x256xf32>
    %c128_83 = arith.constant 128 : index
    %c0_84 = arith.constant 0 : index
    %133 = vector.load %arg16[%c128_83, %c0_84] : memref<144x256xf32, #tpu.memory_space<vmem>>, vector<16x256xf32>
    tpu.vector_store %arg16[%c128_83, %c0_84], %132 {strides = array<i32>} : memref<144x256xf32, #tpu.memory_space<vmem>>, vector<16x256xf32>,
    %c0_85 = arith.constant 0 : index
    %c0_86 = arith.constant 0 : index
    %134 = vector.load %arg6[%c0_85, %c0_86] : memref<16x144xf32, #tpu.memory_space<vmem>>, vector<16x144xf32>
    %c0_87 = arith.constant 0 : index
    %c0_88 = arith.constant 0 : index
    %135 = vector.load %arg16[%c0_87, %c0_88] : memref<144x256xf32, #tpu.memory_space<vmem>>, vector<144x256xf32>
    %136 = arith.truncf %134 : vector<16x144xf32> to vector<16x144xbf16>
    %137 = arith.extf %136 : vector<16x144xbf16> to vector<16x144xf32>
    %138 = arith.subf %134, %137 : vector<16x144xf32>
    %139 = arith.truncf %138 : vector<16x144xf32> to vector<16x144xbf16>
    %140 = arith.truncf %135 : vector<144x256xf32> to vector<144x256xbf16>
    %141 = arith.extf %140 : vector<144x256xbf16> to vector<144x256xf32>
    %142 = arith.subf %135, %141 : vector<144x256xf32>
    %143 = arith.truncf %142 : vector<144x256xf32> to vector<144x256xbf16>
    %cst_89 = arith.constant dense<0.000000e+00> : vector<16x256xf32>
    %144 = tpu.matmul %136, %140, %cst_89 {dimension_numbers = #tpu.dot_dimension_numbers<[1], [0], [0], [1], [0, 0, 1, 1], [], []>} : vector<16x144xbf16>, vector<144x256xbf16>, vector<16x256xf32> -> vector<16x256xf32>
    %cst_90 = arith.constant dense<0.000000e+00> : vector<16x256xf32>
    %145 = tpu.matmul %136, %143, %cst_90 {dimension_numbers = #tpu.dot_dimension_numbers<[1], [0], [0], [1], [0, 0, 1, 1], [], []>} : vector<16x144xbf16>, vector<144x256xbf16>, vector<16x256xf32> -> vector<16x256xf32>
    %146 = arith.addf %144, %145 : vector<16x256xf32>
    %cst_91 = arith.constant dense<0.000000e+00> : vector<16x256xf32>
    %147 = tpu.matmul %139, %140, %cst_91 {dimension_numbers = #tpu.dot_dimension_numbers<[1], [0], [0], [1], [0, 0, 1, 1], [], []>} : vector<16x144xbf16>, vector<144x256xbf16>, vector<16x256xf32> -> vector<16x256xf32>
    %148 = arith.addf %146, %147 : vector<16x256xf32>
    %c0_92 = arith.constant 0 : index
    %c0_93 = arith.constant 0 : index
    %149 = vector.load %arg7[%c0_92, %c0_93] : memref<16x1xf32, #tpu.memory_space<vmem>>, vector<16x1xf32>
    %150 = vector.broadcast %149 : vector<16x1xf32> to vector<16x256xf32>
    %151 = arith.addf %148, %150 : vector<16x256xf32>
    %cst_94 = arith.constant 0.000000e+00 : f32
    %152 = vector.broadcast %cst_94 : f32 to vector<16x256xf32>
    %153 = arith.maximumf %151, %152 : vector<16x256xf32>
    %c0_95 = arith.constant 0 : index
    %c0_96 = arith.constant 0 : index
    %154 = vector.load %arg8[%c0_95, %c0_96] : memref<32x16xf32, #tpu.memory_space<vmem>>, vector<32x16xf32>
    %155 = arith.truncf %154 : vector<32x16xf32> to vector<32x16xbf16>
    %156 = arith.extf %155 : vector<32x16xbf16> to vector<32x16xf32>
    %157 = arith.subf %154, %156 : vector<32x16xf32>
    %158 = arith.truncf %157 : vector<32x16xf32> to vector<32x16xbf16>
    %159 = arith.truncf %153 : vector<16x256xf32> to vector<16x256xbf16>
    %160 = arith.extf %159 : vector<16x256xbf16> to vector<16x256xf32>
    %161 = arith.subf %153, %160 : vector<16x256xf32>
    %162 = arith.truncf %161 : vector<16x256xf32> to vector<16x256xbf16>
    %cst_97 = arith.constant dense<0.000000e+00> : vector<32x256xf32>
    %163 = tpu.matmul %155, %159, %cst_97 {dimension_numbers = #tpu.dot_dimension_numbers<[1], [0], [0], [1], [0, 0, 1, 1], [], []>} : vector<32x16xbf16>, vector<16x256xbf16>, vector<32x256xf32> -> vector<32x256xf32>
    %cst_98 = arith.constant dense<0.000000e+00> : vector<32x256xf32>
    %164 = tpu.matmul %155, %162, %cst_98 {dimension_numbers = #tpu.dot_dimension_numbers<[1], [0], [0], [1], [0, 0, 1, 1], [], []>} : vector<32x16xbf16>, vector<16x256xbf16>, vector<32x256xf32> -> vector<32x256xf32>
    %165 = arith.addf %163, %164 : vector<32x256xf32>
    %cst_99 = arith.constant dense<0.000000e+00> : vector<32x256xf32>
    %166 = tpu.matmul %158, %159, %cst_99 {dimension_numbers = #tpu.dot_dimension_numbers<[1], [0], [0], [1], [0, 0, 1, 1], [], []>} : vector<32x16xbf16>, vector<16x256xbf16>, vector<32x256xf32> -> vector<32x256xf32>
    %167 = arith.addf %165, %166 : vector<32x256xf32>
    %c0_100 = arith.constant 0 : index
    %c0_101 = arith.constant 0 : index
    %168 = vector.load %arg9[%c0_100, %c0_101] : memref<32x1xf32, #tpu.memory_space<vmem>>, vector<32x1xf32>
    %169 = vector.broadcast %168 : vector<32x1xf32> to vector<32x256xf32>
    %170 = arith.addf %167, %169 : vector<32x256xf32>
    %cst_102 = arith.constant dense<0.000000e+00> : vector<32xf32>
    %171 = vector.multi_reduction <add>, %170, %cst_102 [1] : vector<32x256xf32> to vector<32xf32>
    %172 = vector.shape_cast %171 : vector<32xf32> to vector<32x1xf32>
    %cst_103 = arith.constant 3.906250e-03 : f32
    %173 = vector.broadcast %cst_103 : f32 to vector<32x1xf32>
    %174 = arith.mulf %172, %173 : vector<32x1xf32>
    %175 = arith.mulf %170, %170 : vector<32x256xf32>
    %cst_104 = arith.constant dense<0.000000e+00> : vector<32xf32>
    %176 = vector.multi_reduction <add>, %175, %cst_104 [1] : vector<32x256xf32> to vector<32xf32>
    %177 = vector.shape_cast %176 : vector<32xf32> to vector<32x1xf32>
    %cst_105 = arith.constant 3.906250e-03 : f32
    %178 = vector.broadcast %cst_105 : f32 to vector<32x1xf32>
    %179 = arith.mulf %177, %178 : vector<32x1xf32>
    %180 = arith.mulf %174, %174 : vector<32x1xf32>
    %181 = arith.subf %179, %180 : vector<32x1xf32>
    %cst_106 = arith.constant 9.99999974E-6 : f32
    %182 = vector.broadcast %cst_106 : f32 to vector<32x1xf32>
    %183 = arith.addf %181, %182 : vector<32x1xf32>
    %184 = math.rsqrt %183 : vector<32x1xf32>
    %c0_107 = arith.constant 0 : index
    %c0_108 = arith.constant 0 : index
    %185 = vector.load %arg10[%c0_107, %c0_108] : memref<32x1xf32, #tpu.memory_space<vmem>>, vector<32x1xf32>
    %186 = arith.mulf %184, %185 : vector<32x1xf32>
    %c0_109 = arith.constant 0 : index
    %c0_110 = arith.constant 0 : index
    %187 = vector.load %arg11[%c0_109, %c0_110] : memref<32x1xf32, #tpu.memory_space<vmem>>, vector<32x1xf32>
    %188 = arith.mulf %174, %186 : vector<32x1xf32>
    %189 = arith.subf %187, %188 : vector<32x1xf32>
    %190 = vector.broadcast %186 : vector<32x1xf32> to vector<32x256xf32>
    %191 = arith.mulf %170, %190 : vector<32x256xf32>
    %192 = vector.broadcast %189 : vector<32x1xf32> to vector<32x256xf32>
    %193 = arith.addf %191, %192 : vector<32x256xf32>
    %c0_111 = arith.constant 0 : index
    %c0_112 = arith.constant 0 : index
    %c0_113 = arith.constant 0 : index
    %194 = vector.load %arg12[%c0_111, %c0_112, %c0_113] : memref<1x32x256xf32, #tpu.memory_space<vmem>>, vector<1x32x256xf32>
    %195 = vector.shape_cast %194 : vector<1x32x256xf32> to vector<32x256xf32>
    %196 = vector.shape_cast %193 : vector<32x256xf32> to vector<1x32x256xf32>
    tpu.vector_store %arg12[%c0_111, %c0_112, %c0_113], %196 {strides = array<i32>} : memref<1x32x256xf32, #tpu.memory_space<vmem>>, vector<1x32x256xf32>,
    return
  }
  func.func @transform_0(%arg0: i32) -> (i32, i32, i32) {
    %c0_i32 = arith.constant 0 : i32
    %c0_i32_0 = arith.constant 0 : i32
    %c0_i32_1 = arith.constant 0 : i32
    return %arg0, %c0_i32, %c0_i32_0 : i32, i32, i32
  }
  func.func @transform_1(%arg0: i32) -> (i32, i32) {
    %c0_i32 = arith.constant 0 : i32
    %c0_i32_0 = arith.constant 0 : i32
    %c0_i32_1 = arith.constant 0 : i32
    return %c0_i32, %c0_i32_0 : i32, i32
  }
  func.func @transform_2(%arg0: i32) -> (i32, i32) {
    %c0_i32 = arith.constant 0 : i32
    %c0_i32_0 = arith.constant 0 : i32
    %c0_i32_1 = arith.constant 0 : i32
    return %c0_i32, %c0_i32_0 : i32, i32
  }
  func.func @transform_3(%arg0: i32) -> (i32, i32) {
    %c0_i32 = arith.constant 0 : i32
    %c0_i32_0 = arith.constant 0 : i32
    %c0_i32_1 = arith.constant 0 : i32
    return %c0_i32, %c0_i32_0 : i32, i32
  }
  func.func @transform_4(%arg0: i32) -> (i32, i32) {
    %c0_i32 = arith.constant 0 : i32
    %c0_i32_0 = arith.constant 0 : i32
    %c0_i32_1 = arith.constant 0 : i32
    return %c0_i32, %c0_i32_0 : i32, i32
  }
  func.func @transform_5(%arg0: i32) -> (i32, i32) {
    %c0_i32 = arith.constant 0 : i32
    %c0_i32_0 = arith.constant 0 : i32
    %c0_i32_1 = arith.constant 0 : i32
    return %c0_i32, %c0_i32_0 : i32, i32
  }
  func.func @transform_6(%arg0: i32) -> (i32, i32) {
    %c0_i32 = arith.constant 0 : i32
    %c0_i32_0 = arith.constant 0 : i32
    %c0_i32_1 = arith.constant 0 : i32
    return %c0_i32, %c0_i32_0 : i32, i32
  }
  func.func @transform_7(%arg0: i32) -> (i32, i32) {
    %c0_i32 = arith.constant 0 : i32
    %c0_i32_0 = arith.constant 0 : i32
    %c0_i32_1 = arith.constant 0 : i32
    return %c0_i32, %c0_i32_0 : i32, i32
  }
  func.func @transform_8(%arg0: i32) -> (i32, i32) {
    %c0_i32 = arith.constant 0 : i32
    %c0_i32_0 = arith.constant 0 : i32
    %c0_i32_1 = arith.constant 0 : i32
    return %c0_i32, %c0_i32_0 : i32, i32
  }
  func.func @transform_9(%arg0: i32) -> (i32, i32) {
    %c0_i32 = arith.constant 0 : i32
    %c0_i32_0 = arith.constant 0 : i32
    %c0_i32_1 = arith.constant 0 : i32
    return %c0_i32, %c0_i32_0 : i32, i32
  }
  func.func @transform_10(%arg0: i32) -> (i32, i32) {
    %c0_i32 = arith.constant 0 : i32
    %c0_i32_0 = arith.constant 0 : i32
    %c0_i32_1 = arith.constant 0 : i32
    return %c0_i32, %c0_i32_0 : i32, i32
  }
  func.func @transform_11(%arg0: i32) -> (i32, i32, i32) {
    %c0_i32 = arith.constant 0 : i32
    %c0_i32_0 = arith.constant 0 : i32
    %c0_i32_1 = arith.constant 0 : i32
    return %arg0, %c0_i32, %c0_i32_0 : i32, i32, i32
  }
}

</mosaic_0001>

<bundles_post_ra>
// kernel: scm_forward.1
= control target key start
LH: loop header
LB: loop body
LE: loop exit
PB: predicated region body
PF: predicated region fallthrough
CT: control target
= control target key end

     0   :  { %s2513_s17 = smov 0   ;;  %s3230_s0 = inlined_call_operand.vmem [shape: f32[2,3,256], index: 0, kind: input, shape index: {}]   ;;  %s3231_s1 = inlined_call_operand.vmem [shape: f32[8,27], index: 1, kind: input, shape index: {}]   ;;  %s3232_s2 = inlined_call_operand.vmem [shape: f32[8,1], index: 2, kind: input, shape index: {}]   ;;  %s3233_s3 = inlined_call_operand.vmem [shape: f32[16,8], index: 3, kind: input, shape index: {}]   ;;  %s3234_s4 = inlined_call_operand.vmem [shape: f32[16,1], index: 4, kind: input, shape index: {}]   ;;  %s3235_s5 = inlined_call_operand.vmem [shape: f32[16,144], index: 5, kind: input, shape index: {}]   ;;  %s3236_s6 = inlined_call_operand.vmem [shape: f32[16,1], index: 6, kind: input, shape index: {}]   ;;  %s3237_s7 = inlined_call_operand.vmem [shape: f32[32,16], index: 7, kind: input, shape index: {}]   ;;  %s3238_s8 = inlined_call_operand.vmem [shape: f32[32,1], index: 8, kind: input, shape index: {}]   ;;  %s3239_s9 = inlined_call_operand.vmem [shape: f32[32,1], index: 9, kind: input, shape index: {}]   ;;  %s3240_s10 = inlined_call_operand.vmem [shape: f32[32,1], index: 10, kind: input, shape index: {}]   ;;  %s3241_s11 = inlined_call_operand.vmem [shape: f32[2,32,256], index: 11, kind: output, shape index: {}]  }
   0x1 LB: > { %s2317_s18 = sadd.s32 4294967295, %s2440_s17   ;;  %p2321_p0 = scmp.ge.s32.totalorder %s2440_s17, 1  ;;  %s2440_s17 = sphi %s2513_s17, %s21_s17  }
   0x2   : > { %p337_p1 = scmp.lt.s32.totalorder %s2440_s17, 3 }
   0x4   : > { %p338_p2 = pnand %p2321_p0, %p337_p1 }
   0x5   : > { %s2443_s19 = smov (!%p338_p2), 111   ;;  %s2444_s20 = smov (!%p338_p2), 127  }
   0x6   : > { %341 = sbr.rel (%p338_p2) target bundleno = 1600 (0x640), region = 64  ;;  %s2445_s21 = smov (!%p338_p2), 15  }
   0x7   : > { %s2446_s22 = smov (!%p338_p2), 113   ;;  %s2447_s23 = smov (!%p338_p2), 1  }
   0x8   : > { %s2448_s24 = smov (!%p338_p2), 17   ;;  %p377_p3 = scmp.lt.s32.totalorder (!%p338_p2), %s2317_s18, 1 }
   0x9   : > { %s2449_s29 = smov (!%p338_p2), 16   ;;  %s2450_s30 = smov (!%p338_p2), 112  }
   0xb   : > { %v388_v0 = vlaneseq  ;;  %v2442_v1 = vmov 0.0   ;;  %vm436_vm3 = vcmask 1043456   ;;  %s3243_s18 = smov (!%p377_p3, %s2317_s18), 1  ;;  %vm441_vm5 = vcmask 908288  }
   0xc   : > { %427 = vst [vmem:[#allocation2] sm:$0x7] %v2442_v1  ;;  %s2362_s25 = sshll.u32 %s3243_s18, 3  ;;  %vm503_vm6 = vcmask 924672   ;;  %vm540_vm7 = vcmask 1039360   ;;  %vm563_vm8 = vcmask 7168  }
   0xd   : > { %v389_v2 = vand.u32 127, %v388_v0  ;;  %428 = vst [vmem:[#allocation2 + $0xc] sm:$0x7] %v2442_v1  ;;  %s381_s28 = scalar_lea.vmem %s3230_s0, %s2362_s25  ;;  %vm526_vm9 = vcmask 121856   ;;  %vm461_vm10 = vcmask 138240   ;;  %vm487_vm11 = vcmask 130048  }
   0xe   : > { %v429_v14 = vld [vmem:[%s381_s28] sm:$0x77]  ;;  %vm667_vm12 = vcmask 916480   ;;  %vm745_vm13 = vcmask 1044480   ;;  %vm746_vm14 = vcmask 1045504   ;;  %vm741_vm15 = vcmask 220160  }
   0xf   : > { %v390_v3 = vadd.s32 128, %v389_v2  ;;  %v395_v4 = vand.u32 15, %v389_v2  ;;  %430 = vst [vmem:[#allocation2 + $0x4] sm:$0x77] %v429_v14 }
  0x11   : > { %v402_v5 = vand.u32 15, %v390_v3  ;;  %vm415_vm0 = vcmp.ge.s32.totalorder %v395_v4, 1  ;;  %vm421_vm4 = vcmp.le.s32.totalorder %v395_v4, 14 }
  0x12   : > { %v2524_v6 = vsel %vm415_vm0, 1.0, %v2442_v1  ;;  %v2540_v12 = vsel %vm421_vm4, 1.0, %v2442_v1  ;;  %vm893_vm0 = vcmask 64512  }
  0x13   : > { %vm416_vm1 = vcmp.ge.s32.totalorder %v402_v5, 1  ;;  %vm422_vm2 = vcmp.le.s32.totalorder %v402_v5, 14 }
  0x14   : > { %v2527_v7 = vsel %vm416_vm1, 1.0, %v2442_v1  ;;  %v2531_v9 = vsel %vm422_vm2, 1.0, %v2442_v1  ;;  %v581_v52 = vld [vmem:[#allocation2 + $0xc] sm:$0x7] }
  0x15   : > { %v435_v8 = vrot.slane %v2527_v7, 4  ;;  %v498_v11 = vrot.slane %v2531_v9, 4  ;;  %v616_v60 = vld [vmem:[#allocation2 + $0xc] sm:$0x7] }
  0x16   : > { %v432_v16 = vld [vmem:[#allocation2 + $0x8] sm:$0x7]  ;;  %v431_v17 = vld [vmem:[#allocation2] sm:$0x77] }
  0x17   : > { %v437_v10 = vsel %vm436_vm3, %v2524_v6, %v435_v8  ;;  %v499_v13 = vsel %vm436_vm3, %v2540_v12, %v498_v11  ;;  %v468_v22 = vld [vmem:[#allocation2] sm:$0x77]  ;;  %v469_v24 = vld [vmem:[#allocation2 + $0x8] sm:$0x7] }
  0x18   : > { %438 = vrot.lane.b32.xlu0 %v437_v10, %s2443_s19  ;;  %537 = vrot.lane.b32.xlu1 %v437_v10, %s2444_s20  ;;  %v495_v29 = vld [vmem:[#allocation2 + $0x8] sm:$0x7]  ;;  %v494_v30 = vld [vmem:[#allocation2] sm:$0x77] }
  0x19   : > { %617 = vrot.lane.b32.xlu2 %v437_v10, %s2445_s21  ;;  %v536_v41 = vld [vmem:[#allocation2 + $0x8] sm:$0x7]  ;;  %v535_v45 = vld [vmem:[#allocation2] sm:$0x77] }
  0x1a   : > { %v570_v59 = vld [vmem:[#allocation2 + $0x4] sm:$0x77] }
  0x1b   : > { %v580_v2 = vld [vmem:[#allocation2 + $0x4] sm:$0x77] }
  0x20   : > { %500 = vrot.lane.b32.xlu0 %v499_v13, %s2446_s22  ;;  %582 = vrot.lane.b32.xlu1 %v499_v13, %s2447_s23 }
  0x21   : > { %676 = vrot.lane.b32.xlu2 %v499_v13, %s2448_s24  ;;  %v649_v13 = vld [vmem:[#allocation2 + $0xc] sm:$0x7] }
  0x73   : > { %v618_v57 = vpop.permute.xlu2 %617 }
  0x74   : > { %v619_v61 = vrot.slane %v618_v57, 4 }
  0x76   : > { %v624_v0 = vmul.f32 %v619_v61, %v616_v60 }
  0x7b   : > { %v677_v14 = vpop.permute.xlu2 %676 }
  0x8a   : > { %v439_v15 = vpop.permute.xlu0 %438  ;;  %v538_v33 = vpop.permute.xlu1 %537 }
  0x8b   : > { %v440_v18 = vrot.slane %v439_v15, 4  ;;  %v539_v42 = vrot.slane %v538_v33, 4 }
  0x8d   : > { %v442_v19 = vsel %vm441_vm5, %v440_v18, %v439_v15  ;;  %v446_v20 = vmul.f32 %v440_v18, %v432_v16  ;;  %v545_v43 = vmul.f32 %v539_v42, %v536_v41  ;;  %v541_v46 = vsel %vm540_vm7, %v539_v42, %v538_v33  ;;  %v615_v15 = vld [vmem:[#allocation2 + $0x4] sm:$0x77] }
  0x8e   : > { %v445_v21 = vmul.f32 %v442_v19, %v431_v17  ;;  %v544_v49 = vmul.f32 %v541_v46, %v535_v45  ;;  %v620_v16 = vsel %vm526_vm9, %v619_v61, %v618_v57  ;;  %v678_v19 = vrot.slane %v677_v14, 4 }
  0x8f   : > { %451 = vst [vmem:[#allocation1 + $0x10] ss:$2 sm:$0xff] %v446_v20  ;;  %v675_v20 = vld [vmem:[#allocation2 + $0xc] sm:$0x7] }
  0x90   : > { %449 = vst [vmem:[#allocation1] ss:$2 sm:$0xff] %v445_v21  ;;  %v623_v21 = vmul.f32 %v620_v16, %v615_v15 }
  0x92   : > { %v501_v25 = vpop.permute.xlu0 %500  ;;  %v583_v44 = vpop.permute.xlu1 %582 }
  0x93   : > { %v502_v28 = vrot.slane %v501_v25, 4  ;;  %v584_v48 = vrot.slane %v583_v44, 4 }
  0x95   : > { %v504_v31 = vsel %vm503_vm6, %v502_v28, %v501_v25  ;;  %v508_v32 = vmul.f32 %v502_v28, %v495_v29  ;;  %v589_v56 = vmul.f32 %v584_v48, %v581_v52  ;;  %v585_v3 = vsel %vm563_vm8, %v584_v48, %v583_v44  ;;  %v648_v29 = vld [vmem:[#allocation2 + $0x4] sm:$0x77] }
  0x96   : > { %v454_v23 = vld.sshfl [vmem:[#allocation1 + $0x10] sm:$0xff pattern:$0x75316420]  ;;  %v507_v37 = vmul.f32 %v504_v31, %v494_v30  ;;  %v588_v11 = vmul.f32 %v585_v3, %v580_v2 }
  0x97   : > { %v452_v26 = vld.sshfl [vmem:[#allocation1] sm:$0xff pattern:$0x75316420]  ;;  %v453_v27 = vld.sshfl [vmem:[#allocation1 + $0x8] sm:$0xff pattern:$0x75316420]  ;;  %459 = vrot.lane.b32.xlu2 %v454_v23, %s2448_s24 }
  0x98   : > { %472 = vst [vmem:[#allocation1] ss:$2 sm:$0xff] %v468_v22  ;;  %457 = vrot.lane.b32.xlu1 %v453_v27, %s2448_s24  ;;  %455 = vrot.lane.b32.xlu0 %v452_v26, %s2448_s24  ;;  %v683_v26 = vmul.f32 %v678_v19, %v675_v20 }
  0x99   : > { %474 = vst [vmem:[#allocation1 + $0x10] ss:$2 sm:$0xff] %v469_v24 }
  0x9f   : > { %v476_v34 = vld.sshfl [vmem:[#allocation1 + $0x8] sm:$0xff pattern:$0x75316420]  ;;  %v475_v35 = vld.sshfl [vmem:[#allocation1] sm:$0xff pattern:$0x75316420] }
  0xa0   : > { %v477_v36 = vld.sshfl [vmem:[#allocation1 + $0x10] sm:$0xff pattern:$0x75316420]  ;;  %v479_v38 = vrot.slane %v476_v34, 5  ;;  %v478_v39 = vrot.slane %v475_v35, 5  ;;  %v679_v35 = vsel %vm461_vm10, %v678_v19, %v677_v14 }
  0xa1   : > { %513 = vst [vmem:[#allocation1 + $0x10] ss:$2 sm:$0xff] %v508_v32  ;;  %v480_v40 = vrot.slane %v477_v36, 5  ;;  %v674_v34 = vld [vmem:[#allocation2 + $0x4] sm:$0x77] }
  0xa2   : > { %483 = vrot.lane.b32.xlu1 %v479_v38, %s2449_s29  ;;  %511 = vst [vmem:[#allocation1] ss:$2 sm:$0xff] %v507_v37  ;;  %481 = vrot.lane.b32.xlu0 %v478_v39, %s2449_s29  ;;  %v682_v37 = vmul.f32 %v679_v35, %v674_v34 }
  0xa3   : > { %485 = vrot.lane.b32.xlu2 %v480_v40, %s2449_s29 }
  0xa8   : > { %v516_v47 = vld.sshfl [vmem:[#allocation1 + $0x10] sm:$0xff pattern:$0x75316420] }
  0xa9   : > { %v519_v50 = vrot.slane %v516_v47, 2  ;;  %550 = vst [vmem:[#allocation1 + $0x10] ss:$2 sm:$0xff] %v545_v43  ;;  %v515_v51 = vld.sshfl [vmem:[#allocation1 + $0x8] sm:$0xff pattern:$0x75316420] }
  0xaa   : > { %v518_v53 = vrot.slane %v515_v51, 2  ;;  %v514_v54 = vld.sshfl [vmem:[#allocation1] sm:$0xff pattern:$0x75316420] }
  0xab   : > { %524 = vrot.lane.b32.xlu2 %v519_v50, %s2445_s21  ;;  %v517_v55 = vrot.slane %v514_v54, 2  ;;  %548 = vst [vmem:[#allocation1] ss:$2 sm:$0xff] %v544_v49 }
  0xac   : > { %522 = vrot.lane.b32.xlu1 %v518_v53, %s2445_s21 }
  0xad   : > { %520 = vrot.lane.b32.xlu0 %v517_v55, %s2445_s21 }
  0xb0   : > { %v2569_v58 = vld.sshfl [vmem:[#allocation1 + $0x10] sm:$0xff pattern:$0x75316420] }
  0xb1   : > { %594 = vst [vmem:[#allocation1 + $0x10] ss:$2 sm:$0xff] %v589_v56  ;;  %v556_v42 = vrot.slane %v2569_v58, 7 }
  0xb2   : > { %v2571_v62 = vld.sshfl [vmem:[#allocation1] sm:$0xff pattern:$0x75316420]  ;;  %v2573_v63 = vld.sshfl [vmem:[#allocation1 + $0x8] sm:$0xff pattern:$0x75316420] }
  0xb3   : > { %573 = vst [vmem:[#allocation1 + $0x1] ss:$2 sm:$0xff] %v570_v59  ;;  %v555_v45 = vrot.slane %v2573_v63, 7  ;;  %v554_v46 = vrot.slane %v2571_v62, 7 }
  0xb8   : > { %v597_v4 = vld.sshfl [vmem:[#allocation1 + $0x10] sm:$0xff pattern:$0x75316420] }
  0xb9   : > { %v600_v5 = vrot.slane %v597_v4, 1  ;;  %629 = vst [vmem:[#allocation1 + $0x10] ss:$2 sm:$0xff] %v624_v0 }
  0xba   : > { %v574_v8 = vld.sshfl [vmem:[#allocation1] sm:$0xff pattern:$0x75316420]  ;;  %v575_v10 = vld.sshfl [vmem:[#allocation1 + $0x8] sm:$0xff pattern:$0x75316420] }
  0xbb   : > { %578 = vst [vmem:[#allocation3 + $0x18] sm:$0x70] %v574_v8  ;;  %605 = vrot.lane.b32.xlu2 %v600_v5, %s2444_s20 }
  0xbc   : > { %579 = vst [vmem:[#allocation3 + $0x10] sm:$0x70] %v575_v10 }
  0xbd   : > { %592 = vst [vmem:[#allocation1] ss:$2 sm:$0xff] %v588_v11 }
  0xc0   : > { %v632_v17 = vld.sshfl [vmem:[#allocation1 + $0x10] sm:$0xff pattern:$0x75316420] }
  0xc1   : > { %v635_v18 = vrot.slane %v632_v17, 6  ;;  %654 = vst [vmem:[#allocation1 + $0x10] ss:$2 sm:$0xff] %v649_v13 }
  0xc3   : > { %640 = vrot.lane.b32.xlu2 %v635_v18, %s2446_s22 }
  0xc4   : > { %v596_v22 = vld.sshfl [vmem:[#allocation1 + $0x8] sm:$0xff pattern:$0x75316420]  ;;  %v595_v23 = vld.sshfl [vmem:[#allocation1] sm:$0xff pattern:$0x75316420] }
  0xc5   : > { %v599_v24 = vrot.slane %v596_v22, 1  ;;  %v598_v25 = vrot.slane %v595_v23, 1  ;;  %627 = vst [vmem:[#allocation1] ss:$2 sm:$0xff] %v623_v21 }
  0xc7   : > { %603 = vrot.lane.b32.xlu1 %v599_v24, %s2444_s20  ;;  %601 = vrot.lane.b32.xlu0 %v598_v25, %s2444_s20 }
  0xc8   : > { %v657_v27 = vld.sshfl [vmem:[#allocation1 + $0x10] sm:$0xff pattern:$0x75316420] }
  0xc9   : > { %v660_v28 = vrot.slane %v657_v27, 3  ;;  %688 = vst [vmem:[#allocation1 + $0x10] ss:$2 sm:$0xff] %v683_v26 }
  0xcb   : > { %665 = vrot.lane.b32.xlu2 %v660_v28, %s2450_s30 }
  0xcc   : > { %v631_v30 = vld.sshfl [vmem:[#allocation1 + $0x8] sm:$0xff pattern:$0x75316420]  ;;  %v630_v31 = vld.sshfl [vmem:[#allocation1] sm:$0xff pattern:$0x75316420] }
  0xcd   : > { %v634_v32 = vrot.slane %v631_v30, 6  ;;  %v633_v33 = vrot.slane %v630_v31, 6  ;;  %652 = vst [vmem:[#allocation1] ss:$2 sm:$0xff] %v648_v29 }
  0xcf   : > { %638 = vrot.lane.b32.xlu1 %v634_v32, %s2446_s22  ;;  %636 = vrot.lane.b32.xlu0 %v633_v33, %s2446_s22 }
  0xd0   : > { %v691_v36 = vld.sshfl [vmem:[#allocation1 + $0x10] sm:$0xff pattern:$0x75316420] }
  0xd3   : > { %696 = vrot.lane.b32.xlu2 %v691_v36, %s2443_s19 }
  0xd4   : > { %v656_v38 = vld.sshfl [vmem:[#allocation1 + $0x8] sm:$0xff pattern:$0x75316420]  ;;  %v655_v39 = vld.sshfl [vmem:[#allocation1] sm:$0xff pattern:$0x75316420] }
  0xd5   : > { %v659_v40 = vrot.slane %v656_v38, 3  ;;  %v658_v41 = vrot.slane %v655_v39, 3  ;;  %686 = vst [vmem:[#allocation1] ss:$2 sm:$0xff] %v682_v37  ;;  %v2451_v38 = vmov 65535  }
  0xd6   : > { %v747_v39 = vsel %vm745_vm13, 4294967295, %v2451_v38 }
  0xd7   : > { %663 = vrot.lane.b32.xlu1 %v659_v40, %s2450_s30  ;;  %661 = vrot.lane.b32.xlu0 %v658_v41, %s2450_s30 }
  0xdb   : > { %561 = vrot.lane.b32.xlu2 %v556_v42, %s2447_s23 }
  0xdc   : > { %v690_v43 = vld.sshfl [vmem:[#allocation1 + $0x8] sm:$0xff pattern:$0x75316420]  ;;  %v689_v44 = vld.sshfl [vmem:[#allocation1] sm:$0xff pattern:$0x75316420] }
  0xdf   : > { %694 = vrot.lane.b32.xlu1 %v690_v43, %s2443_s19  ;;  %692 = vrot.lane.b32.xlu0 %v689_v44, %s2443_s19 }
  0xe7   : > { %559 = vrot.lane.b32.xlu1 %v555_v45, %s2447_s23  ;;  %557 = vrot.lane.b32.xlu0 %v554_v46, %s2447_s23 }
  0xf1   : > { %v460_v47 = vpop.permute.xlu2 %459 }
  0xfd   : > { %v486_v52 = vpop.permute.xlu2 %485 }
 0x105   : > { %v525_v57 = vpop.permute.xlu2 %524 }
 0x10a   : > { %v458_v48 = vpop.permute.xlu1 %457  ;;  %v456_v49 = vpop.permute.xlu0 %455 }
 0x10b   : > { %v463_v50 = vsel %vm461_vm10, %v458_v48, %v460_v47  ;;  %v462_v51 = vsel %vm461_vm10, %v456_v49, %v458_v48  ;;  %v748_v47 = vsel %vm746_vm14, %v747_v39, 0 }
 0x10c   : > { %467 = vst [vmem:[#allocation3] sm:$0x7] %v463_v50  ;;  %v862_v50 = vld [vmem:[%s3232_s2] sm:$0xff] }
 0x10d   : > { %466 = vst [vmem:[#allocation3 + $0x30] sm:$0x7] %v462_v51 }
 0x114   : > { %v484_v53 = vpop.permute.xlu1 %483  ;;  %v482_v54 = vpop.permute.xlu0 %481 }
 0x115   : > { %v489_v55 = vsel %vm487_vm11, %v484_v53, %v486_v52  ;;  %v488_v56 = vsel %vm487_vm11, %v482_v54, %v484_v53  ;;  %v606_v62 = vpop.permute.xlu2 %605 }
 0x116   : > { %493 = vst [vmem:[#allocation3] sm:$0x38] %v489_v55  ;;  %v2452_v55 = vmov 0  }
 0x117   : > { %492 = vst [vmem:[#allocation3 + $0x30] sm:$0x38] %v488_v56  ;;  %2383 = vset.pattern.permute.xlu0 %v2452_v55  ;;  %2384 = vset.pattern.permute.xlu1 %v2452_v55 }
 0x118   : > { %865 = vperm.xlu0 %2383, %v862_v50   ;;  %2385 = vset.pattern.permute.xlu2 %v2452_v55 }
 0x11d   : > { %v641_v2 = vpop.permute.xlu2 %640 }
 0x11e   : > { %v523_v58 = vpop.permute.xlu1 %522 }
 0x11f   : > { %v528_v59 = vsel %vm526_vm9, %v523_v58, %v525_v57  ;;  %v521_v60 = vpop.permute.xlu0 %520 }
 0x120   : > { %532 = vst [vmem:[#allocation3] sm:$0xc0] %v528_v59  ;;  %v527_v61 = vsel %vm526_vm9, %v521_v60, %v523_v58 }
 0x121   : > { %534 = vst [vmem:[#allocation3 + $0x10] sm:$0x1] %v528_v59 }
 0x122   : > { %531 = vst [vmem:[#allocation3 + $0x30] sm:$0xc0] %v527_v61 }
 0x123   : > { %533 = vst [vmem:[#allocation3 + $0x18] sm:$0x1] %v527_v61 }
 0x125   : > { %v666_v13 = vpop.permute.xlu2 %665 }
 0x127   : > { %v706_v33 = vld [vmem:[#allocation3] sm:$0xff] }
 0x129   : > { %v705_v32 = vld [vmem:[#allocation3 + $0x30] sm:$0xff] }
 0x12a   : > { %v717_v42 = vpack.c.bf16 %v706_v33, %v705_v32 }
 0x12d   : > { %v697_v18 = vpop.permute.xlu2 %696 }
 0x135   : > { %v562_v26 = vpop.permute.xlu2 %561 }
 0x139   : > { %v604_v63 = vpop.permute.xlu1 %603  ;;  %v602_v0 = vpop.permute.xlu0 %601 }
 0x13a   : > { %v608_v3 = vsel %vm540_vm7, %v604_v63, %v606_v62  ;;  %v607_v4 = vsel %vm540_vm7, %v602_v0, %v604_v63  ;;  %v721_v62 = vunpack.c.l.bf16 %v717_v42  ;;  %v722_v63 = vunpack.c.h.bf16 %v717_v42 }
 0x13b   : > { %612 = vst [vmem:[#allocation3 + $0x10] sm:$0x80] %v608_v3 }
 0x13c   : > { %614 = vst [vmem:[#allocation3 + $0x20] sm:$0x3] %v608_v3 }
 0x13d   : > { %611 = vst [vmem:[#allocation3 + $0x18] sm:$0x80] %v607_v4 }
 0x13e   : > { %613 = vst [vmem:[#allocation3 + $0x8] sm:$0x3] %v607_v4  ;;  %v785_v4 = vunpack.c.l.b16 %v717_v42 }
 0x141   : > { %v639_v5 = vpop.permute.xlu1 %638  ;;  %v637_v8 = vpop.permute.xlu0 %636 }
 0x142   : > { %v643_v10 = vsel %vm503_vm6, %v639_v5, %v641_v2  ;;  %v642_v11 = vsel %vm503_vm6, %v637_v8, %v639_v5  ;;  %v786_v5 = vunpack.c.h.b16 %v717_v42 }
 0x143   : > { %647 = vst [vmem:[#allocation3 + $0x20] sm:$0x1c] %v643_v10 }
 0x144   : > { %646 = vst [vmem:[#allocation3 + $0x8] sm:$0x1c] %v642_v11 }
 0x149   : > { %v664_v14 = vpop.permute.xlu1 %663  ;;  %v662_v15 = vpop.permute.xlu0 %661 }
 0x14a   : > { %v669_v16 = vsel %vm667_vm12, %v664_v14, %v666_v13  ;;  %v668_v17 = vsel %vm667_vm12, %v662_v15, %v664_v14  ;;  %v704_v14 = vld [vmem:[%s3231_s1] sm:$0xff]  ;;  %v729_v15 = vsub.f32 %v705_v32, %v721_v62 }
 0x14b   : > { %673 = vst [vmem:[#allocation3 + $0x20] sm:$0xe0] %v669_v16  ;;  %v730_v16 = vsub.f32 %v706_v33, %v722_v63 }
 0x14c   : > { %672 = vst [vmem:[#allocation3 + $0x8] sm:$0xe0] %v668_v17 }
 0x151   : > { %v695_v19 = vpop.permute.xlu1 %694  ;;  %v693_v20 = vpop.permute.xlu0 %692 }
 0x152   : > { %v699_v21 = vsel %vm441_vm5, %v695_v19, %v697_v18  ;;  %v698_v22 = vsel %vm441_vm5, %v693_v20, %v695_v19  ;;  %v710_v24 = vld [vmem:[#allocation3 + $0x20] sm:$0xff] }
 0x153   : > { %703 = vst [vmem:[#allocation3 + $0x38] sm:$0x7] %v699_v21  ;;  %v709_v23 = vld [vmem:[#allocation3 + $0x8] sm:$0xff]  ;;  %v713_v21 = vpack.c.bf16 %v704_v14, %v704_v14 }
 0x154   : > { %702 = vst [vmem:[#allocation3 + $0x28] sm:$0x7] %v698_v22  ;;  %v719_v25 = vpack.c.bf16 %v710_v24, %v709_v23 }
 0x156   : > { %v725_v35 = vunpack.c.l.bf16 %v719_v25  ;;  %v726_v36 = vunpack.c.h.bf16 %v719_v25  ;;  %v789_v40 = vunpack.c.l.b16 %v719_v25  ;;  %v790_v41 = vunpack.c.h.b16 %v719_v25 }
 0x158   : > { %v733_v48 = vsub.f32 %v709_v23, %v725_v35  ;;  %v734_v49 = vsub.f32 %v710_v24, %v726_v36  ;;  %v714_v24 = vunpack.c.l.bf16 %v713_v21 }
 0x159   : > { %v560_v27 = vpop.permute.xlu1 %559  ;;  %v558_v28 = vpop.permute.xlu0 %557 }
 0x15a   : > { %v565_v29 = vsel %vm563_vm8, %v560_v27, %v562_v26  ;;  %v564_v30 = vsel %vm563_vm8, %v558_v28, %v560_v27  ;;  %v712_v31 = vld [vmem:[#allocation3 + $0x38] sm:$0x7]  ;;  %v715_v25 = vsub.f32 %v704_v14, %v714_v24  ;;  %v1005_v27 = vld [vmem:[%s3234_s4] sm:$0xff]  ;;  %v2623_v28 = vpack.i.bf16 %v2527_v7, %v2524_v6 }
 0x15b   : > { %569 = vst [vmem:[#allocation3 + $0x10] sm:$0xe] %v565_v29  ;;  %v711_v34 = vld [vmem:[#allocation3 + $0x28] sm:$0x7]  ;;  %1009 = vperm.xlu1 %2384, %v1005_v27  }
 0x15c   : > { %568 = vst [vmem:[#allocation3 + $0x18] sm:$0xe] %v564_v30  ;;  %v720_v37 = vpack.c.bf16 %v712_v31, %v711_v34  ;;  %v716_v26 = vpack.c.bf16 %v715_v25, %v715_v25  ;;  %2397 = vrot.lane.b32.xlu0 %v2623_v28, %s2444_s20 }
 0x15e   : > { %v791_v43 = vunpack.c.l.b16 %v720_v37  ;;  %v792_v44 = vunpack.c.h.b16 %v720_v37  ;;  %v727_v45 = vunpack.c.l.bf16 %v720_v37  ;;  %v728_v46 = vunpack.c.h.bf16 %v720_v37 }
 0x160   : > { %v795_v51 = vpack.c.b16 %v791_v43, %v789_v40  ;;  %v796_v52 = vpack.c.b16 %v792_v44, %v790_v41  ;;  %v735_v53 = vsub.f32 %v711_v34, %v727_v45  ;;  %v736_v54 = vsub.f32 %v712_v31, %v728_v46  ;;  %v1006_v45 = vld [vmem:[%s3234_s4 + $0x8] sm:$0xff] }
 0x161   : > { %v2401_v31 = vpack.i.bf16 %v2531_v9, %v2540_v12  ;;  %v872_v9 = vld [vmem:[%s3233_s3] sm:$0xff]  ;;  %v873_v12 = vld [vmem:[%s3233_s3 + $0x8] sm:$0xff]  ;;  %1014 = vperm.xlu2 %2385, %v1006_v45  }
 0x162   : > { %v800_v56 = vand.u32 %v795_v51, %v748_v47  ;;  %v803_v57 = vand.u32 %v796_v52, %v748_v47  ;;  %v739_v58 = vpack.c.bf16 %v735_v53, %v733_v48  ;;  %v740_v59 = vpack.c.bf16 %v736_v54, %v734_v49  ;;  %v708_v60 = vld [vmem:[#allocation3 + $0x10] sm:$0xff] }
 0x163   : > { %v707_v61 = vld [vmem:[#allocation3 + $0x18] sm:$0xff]  ;;  %2387 = vrot.lane.b32.xlu1 %v2623_v28, %s2445_s21  ;;  %v874_v48 = vpack.c.bf16 %v872_v9, %v872_v9  ;;  %v875_v49 = vpack.c.bf16 %v873_v12, %v873_v12 }
 0x164   : > { %811 = vmatpush.bf16.msra.mxu2 %v800_v56  ;;  %824 = vmatpush.bf16.msra.mxu3 %v803_v57  ;;  %v750_v0 = vand.u32 %v748_v47, %v739_v58  ;;  %v753_v2 = vand.u32 %v748_v47, %v740_v59  ;;  %v718_v3 = vpack.c.bf16 %v708_v60, %v707_v61 }
 0x165   : > { %2412 = vrot.lane.b32.xlu0 %v2401_v31, %s2448_s24  ;;  %v891_v58 = vunpack.c.l.b16 %v875_v49 }
 0x166   : > { %761 = vmatpush.bf16.msra.mxu0 %v750_v0  ;;  %774 = vmatpush.bf16.msra.mxu1 %v753_v2  ;;  %v787_v8 = vunpack.c.l.b16 %v718_v3  ;;  %v788_v10 = vunpack.c.h.b16 %v718_v3  ;;  %v723_v11 = vunpack.c.l.bf16 %v718_v3  ;;  %v724_v13 = vunpack.c.h.bf16 %v718_v3 }
 0x168   : > { %v793_v17 = vpack.c.b16 %v787_v8, %v785_v4  ;;  %v794_v18 = vpack.c.b16 %v788_v10, %v786_v5  ;;  %v731_v19 = vsub.f32 %v707_v61, %v723_v11  ;;  %v732_v20 = vsub.f32 %v708_v60, %v724_v13 }
 0x169   : > { %2392 = vrot.lane.b32.xlu2 %v2401_v31, %s2447_s23  ;;  %v876_v10 = vunpack.c.l.bf16 %v874_v48  ;;  %v877_v11 = vunpack.c.l.bf16 %v875_v49 }
 0x16a   : > { %812 = vmatpush.bf16.msra.mxu2 %v793_v17  ;;  %825 = vmatpush.bf16.msra.mxu3 %v794_v18  ;;  %v737_v22 = vpack.c.bf16 %v731_v19, %v729_v15  ;;  %v738_v23 = vpack.c.bf16 %v732_v20, %v730_v16 }
 0x16b   : > { %2402 = vrot.lane.b32.xlu1 %v2401_v31, %s2446_s22  ;;  %v878_v13 = vsub.f32 %v872_v9, %v876_v10  ;;  %v879_v14 = vsub.f32 %v873_v12, %v877_v11 }
 0x16c   : > { %762 = vmatpush.bf16.msra.mxu0 %v737_v22  ;;  %775 = vmatpush.bf16.msra.mxu1 %v738_v23 }
 0x16d   : > { %2332 = vmatmul.msk.bf16.vlgmr.msra.gmra.mxu2 %vm741_vm15, %v713_v21  ;;  %2333 = vmatmul.msk.bf16.vlgmr.msra.gmra.mxu3 %vm741_vm15, %v713_v21  ;;  %v880_v15 = vpack.c.bf16 %v879_v14, %v878_v13 }
 0x16e   : > { %2417 = vrot.lane.b32.xlu0 %v2442_v1, %s2450_s30 }
 0x16f   : > { %2330 = vmatmul.msk.bf16.vlgmr.msra.gmra.mxu0 %vm741_vm15, %v713_v21  ;;  %2331 = vmatmul.msk.bf16.vlgmr.msra.gmra.mxu1 %vm741_vm15, %v713_v21 }
 0x170   : > { %840 = vmatpush.bf16.msrb.mxu0 %v800_v56  ;;  %853 = vmatpush.bf16.msrb.mxu1 %v803_v57  ;;  %v890_v57 = vunpack.c.l.b16 %v874_v48 }
 0x171   : > { %2407 = vrot.lane.b32.xlu2 %v2623_v28, %s2443_s19 }
 0x172   : > { %v892_v8 = vpack.c.b16 %v891_v58, %v890_v57 }
 0x174   : > { %841 = vmatpush.bf16.msrb.mxu0 %v793_v17  ;;  %854 = vmatpush.bf16.msrb.mxu1 %v794_v18 }
 0x17f   : > { %2334 = vmatmul.msk.bf16.vlgmr.msrb.gmra.mxu0 %vm741_vm15, %v716_v26  ;;  %2335 = vmatmul.msk.bf16.vlgmr.msrb.gmra.mxu1 %vm741_vm15, %v716_v26 }
 0x18a   : > { %v866_v38 = vpop.permute.xlu0 %865 }
 0x1bb   : > { %v1015_v20 = vpop.permute.xlu2 %1014 }
 0x1c3   : > { %v2393_v24 = vpop.permute.xlu2 %2392 }
 0x1c4   : > { %v2395_v25 = vunpack.i.h.bf16 %v2393_v24 }
 0x1c6   : > { %v1243_v26 = vmul.f32 0.0, %v2395_v25 }
 0x1cd   : > { %v1010_v16 = vpop.permute.xlu1 %1009 }
 0x1ce   : > { %v2398_v21 = vpop.permute.xlu0 %2397 }
 0x1cf   : > { %v2399_v22 = vunpack.i.l.bf16 %v2398_v21 }
 0x1d1   : > { %v1183_v23 = vmul.f32 0.0, %v2399_v22 }
 0x1d3   : > { %1195 = vrot.lane.b32.xlu0 %v1183_v23, %s2447_s23 }
 0x1d5   : > { %v2388_v17 = vpop.permute.xlu1 %2387 }
 0x1d6   : > { %v2390_v18 = vunpack.i.h.bf16 %v2388_v17 }
 0x1d8   : > { %v1293_v19 = vmul.f32 0.0, %v2390_v18 }
 0x1da   : > { %1307 = vrot.lane.b32.xlu2 %v1293_v19, %s2446_s22 }
 0x1db   : > { %1201 = vrot.lane.b32.xlu0 %v1183_v23, %s2447_s23 }
 0x1dd   : > { %v2654_v27 = vpop.permute.xlu1 %2402 }
 0x1de   : > { %v2404_v28 = vunpack.i.l.bf16 %v2654_v27 }
 0x1e2   : > { %1313 = vrot.lane.b32.xlu2 %v1293_v19, %s2446_s22 }
 0x1ea   : > { %1257 = vrot.lane.b32.xlu2 %v1243_v26, %s2444_s20 }
 0x1ec   : > { %v764_v29 = vpop.f32.mrf.mxu0  ;;  %v777_v30 = vpop.f32.mrf.mxu1 }
 0x1f0   : > { %v814_v32 = vpop.f32.mrf.mxu2  ;;  %v827_v33 = vpop.f32.mrf.mxu3 }
 0x1f1   : > { %v815_v7 = vadd.f32 %v814_v32, %v764_v29  ;;  %v828_v37 = vadd.f32 %v827_v33, %v777_v30  ;;  %v1133_v29 = vmul.f32 0.0, %v2404_v28  ;;  %v2661_v30 = vpop.permute.xlu2 %2407  ;;  %v2669_v33 = vunpack.i.l.bf16 %v2388_v17 }
 0x1f2   : > { %1263 = vrot.lane.b32.xlu2 %v1243_v26, %s2444_s20  ;;  %v2409_v31 = vunpack.i.l.bf16 %v2661_v30 }
 0x1f3   : > { %1145 = vrot.lane.b32.xlu0 %v1133_v29, %s2445_s21 }
 0x1f4   : > { %v766_v34 = vpop.f32.mrf.mxu0  ;;  %v779_v35 = vpop.f32.mrf.mxu1  ;;  %v1047_v32 = vmul.f32 0.0, %v2409_v31 }
 0x1f5   : > { %v2671_v34 = vunpack.i.l.bf16 %v2393_v24  ;;  %v2673_v35 = vunpack.i.h.bf16 %v2398_v21 }
 0x1f8   : > { %v816_v36 = vpop.f32.mrf.mxu2  ;;  %v829_v6 = vpop.f32.mrf.mxu3 }
 0x1f9   : > { %v2677_v36 = vsel %vm526_vm9, %v2669_v33, %v2390_v18  ;;  %v2681_v6 = vsel %vm563_vm8, %v2671_v34, %v2395_v25 }
 0x1fa   : > { %1059 = vrot.lane.b32.xlu2 %v1047_v32, %s2448_s24 }
 0x1fb   : > { %1151 = vrot.lane.b32.xlu0 %v1133_v29, %s2445_s21 }
 0x1fc   : > { %v843_v39 = vpop.f32.mrf.mxu0  ;;  %v856_v40 = vpop.f32.mrf.mxu1 }
 0x1fd   : > { %v860_v41 = vadd.f32 %v843_v39, %v815_v7  ;;  %v861_v42 = vadd.f32 %v856_v40, %v828_v37  ;;  %v2685_v7 = vsel %vm540_vm7, %v2399_v22, %v2673_v35 }
 0x1ff   : > { %v868_v43 = vadd.f32 %v866_v38, %v860_v41  ;;  %v869_v44 = vadd.f32 %v866_v38, %v861_v42 }
 0x201   : > { %v870_v46 = vmax.f32 %v868_v43, 0.0  ;;  %v871_v47 = vmax.f32 %v869_v44, 0.0 }
 0x202   : > { %1065 = vrot.lane.b32.xlu2 %v1047_v32, %s2448_s24 }
 0x203   : > { %v881_v50 = vpack.c.bf16 %v871_v47, %v870_v46  ;;  %2422 = vrot.lane.b32.xlu0 %v2442_v1, %s2449_s29 }
 0x204   : > { %v845_v51 = vpop.f32.mrf.mxu0  ;;  %v858_v52 = vpop.f32.mrf.mxu1 }
 0x205   : > { %v932_v53 = vunpack.c.l.b16 %v881_v50  ;;  %v933_v54 = vunpack.c.h.b16 %v881_v50  ;;  %v882_v55 = vunpack.c.l.bf16 %v881_v50  ;;  %v883_v56 = vunpack.c.h.bf16 %v881_v50 }
 0x207   : > { %v934_v59 = vpack.c.b16 %v932_v53, %v932_v53  ;;  %v935_v60 = vpack.c.b16 %v933_v54, %v933_v54  ;;  %v884_v61 = vsub.f32 %v870_v46, %v882_v55  ;;  %v885_v62 = vsub.f32 %v871_v47, %v883_v56 }
 0x209   : > { %v937_v63 = vsel %vm436_vm3, %v934_v59, 0  ;;  %v940_v0 = vsel %vm436_vm3, %v935_v60, 0  ;;  %v886_v2 = vpack.c.bf16 %v884_v61, %v884_v61  ;;  %v887_v3 = vpack.c.bf16 %v885_v62, %v885_v62 }
 0x20a   : > { %949 = vmatpush.bf16.msra.mxu0 %v937_v63  ;;  %963 = vmatpush.bf16.msra.mxu1 %v940_v0  ;;  %v2701_v62 = vunpack.i.h.bf16 %v2654_v27 }
 0x20b   : > { %v898_v4 = vsel %vm436_vm3, %v886_v2, 0  ;;  %v901_v5 = vsel %vm436_vm3, %v887_v3, 0 }
 0x20c   : > { %910 = vmatpush.bf16.msrb.mxu2 %v898_v4  ;;  %924 = vmatpush.bf16.msrb.mxu3 %v901_v5  ;;  %v1129_v11 = vsel %vm503_vm6, %v2404_v28, %v2701_v62 }
 0x20d   : > { %2338 = vmatmul.msk.bf16.vlgmr.msra.gmra.mxu0 %vm893_vm0, %v892_v8  ;;  %2339 = vmatmul.msk.bf16.vlgmr.msra.gmra.mxu1 %vm893_vm0, %v892_v8 }
 0x20f   : > { %2336 = vmatmul.msk.bf16.vlgmr.msrb.gmra.mxu2 %vm893_vm0, %v892_v8  ;;  %2337 = vmatmul.msk.bf16.vlgmr.msrb.gmra.mxu3 %vm893_vm0, %v892_v8  ;;  %v2410_v8 = vunpack.i.h.bf16 %v2661_v30 }
 0x210   : > { %980 = vmatpush.bf16.msra.mxu2 %v937_v63  ;;  %994 = vmatpush.bf16.msra.mxu3 %v940_v0 }
 0x211   : > { %v1043_v17 = vsel %vm441_vm5, %v2409_v31, %v2410_v8 }
 0x21f   : > { %2340 = vmatmul.msk.bf16.vlgmr.msra.gmra.mxu2 %vm893_vm0, %v880_v15  ;;  %2341 = vmatmul.msk.bf16.vlgmr.msra.gmra.mxu3 %vm893_vm0, %v880_v15 }
 0x28a   : > { %v951_v40 = vpop.f32.mrf.mxu0  ;;  %v965_v41 = vpop.f32.mrf.mxu1 }
 0x292   : > { %v912_v37 = vpop.f32.mrf.mxu2  ;;  %v926_v1 = vpop.f32.mrf.mxu3 }
 0x293   : > { %v966_v42 = vadd.f32 %v965_v41, %v926_v1  ;;  %v952_v43 = vadd.f32 %v951_v40, %v912_v37  ;;  %v953_v48 = vpop.f32.mrf.mxu0  ;;  %v967_v49 = vpop.f32.mrf.mxu1 }
 0x29a   : > { %v914_v38 = vpop.f32.mrf.mxu2  ;;  %v928_v39 = vpop.f32.mrf.mxu3 }
 0x29b   : > { %v954_v52 = vadd.f32 %v953_v48, %v914_v38  ;;  %v968_v53 = vadd.f32 %v967_v49, %v928_v39  ;;  %v2413_v39 = vpop.permute.xlu0 %2412 }
 0x29c   : > { %v2414_v41 = vunpack.i.l.bf16 %v2413_v39 }
 0x2a2   : > { %v982_v44 = vpop.f32.mrf.mxu2  ;;  %v996_v9 = vpop.f32.mrf.mxu3 }
 0x2a3   : > { %v1001_v12 = vadd.f32 %v982_v44, %v952_v43  ;;  %v1002_v45 = vadd.f32 %v996_v9, %v966_v42  ;;  %v2415_v44 = vunpack.i.h.bf16 %v2413_v39 }
 0x2a5   : > { %v1017_v46 = vadd.f32 %v1010_v16, %v1001_v12  ;;  %v1018_v47 = vadd.f32 %v1010_v16, %v1002_v45  ;;  %v1373_v9 = vsel %vm461_vm10, %v2414_v41, %v2415_v44 }
 0x2a7   : > { %v2687_v50 = vmax.f32 %v1017_v46, 0.0  ;;  %v2689_v51 = vmax.f32 %v1018_v47, 0.0  ;;  %v2789_v46 = vpop.permute.xlu2 %1307 }
 0x2a9   : > { %1341 = vrot.lane.b32.xlu2 %v2689_v51, %s2450_s30  ;;  %1339 = vrot.lane.b32.xlu1 %v2687_v50, %s2450_s30  ;;  %v1291_v54 = vmul.f32 %v2669_v33, %v2687_v50  ;;  %v1473_v59 = vpack.c.bf16 %v2689_v51, %v2687_v50  ;;  %v1241_v10 = vmul.f32 %v2671_v34, %v2687_v50 }
 0x2aa   : > { %v984_v55 = vpop.f32.mrf.mxu2  ;;  %v998_v56 = vpop.f32.mrf.mxu3  ;;  %v1292_v24 = vmul.f32 %v2677_v36, %v2689_v51  ;;  %v1185_v25 = vmul.f32 %v2673_v35, %v2689_v51  ;;  %v1048_v30 = vmul.f32 %v1043_v17, %v2687_v50  ;;  %v1242_v37 = vmul.f32 %v2681_v6, %v2689_v51 }
 0x2ab   : > { %v1003_v57 = vadd.f32 %v984_v55, %v954_v52  ;;  %v1004_v58 = vadd.f32 %v998_v56, %v968_v53  ;;  %1303 = vrot.lane.b32.xlu0 %v1291_v54, %s2446_s22  ;;  %v1499_v63 = vunpack.c.l.bf16 %v1473_v59  ;;  %v1500_v0 = vunpack.c.h.bf16 %v1473_v59  ;;  %v1851_v53 = vld [vmem:[%s3236_s6 + $0x8] sm:$0xff] }
 0x2ac   : > { %v1676_v18 = vunpack.c.h.b16 %v1473_v59  ;;  %v1675_v19 = vunpack.c.l.b16 %v1473_v59  ;;  %v1135_v1 = vmul.f32 %v2701_v62, %v2689_v51  ;;  %v1184_v38 = vmul.f32 %v2685_v7, %v2687_v50  ;;  %v2055_v56 = vld [vmem:[%s3238_s8 + $0x8] sm:$0xff] }
 0x2ad   : > { %v1019_v60 = vadd.f32 %v1015_v20, %v1003_v57  ;;  %v1020_v61 = vadd.f32 %v1015_v20, %v1004_v58  ;;  %v2708_v4 = vsub.f32 %v2687_v50, %v1499_v63  ;;  %v2711_v5 = vsub.f32 %v2689_v51, %v1500_v0 }
 0x2ae   : > { %v1377_v42 = vmul.f32 %v2414_v41, %v2687_v50  ;;  %v1134_v43 = vmul.f32 %v1129_v11, %v2687_v50  ;;  %v1049_v12 = vmul.f32 %v2410_v8, %v2689_v51  ;;  %v1378_v45 = vmul.f32 %v1373_v9, %v2689_v51 }
 0x2af   : > { %v2703_v2 = vmax.f32 %v1019_v60, 0.0  ;;  %v2705_v3 = vmax.f32 %v1020_v61, 0.0  ;;  %v2798_v47 = vpop.permute.xlu2 %1313  ;;  %v1379_v55 = vmul.f32 0.0, %v2415_v44 }
 0x2b1   : > { %1099 = vrot.lane.b32.xlu2 %v2689_v51, %s2449_s29  ;;  %1097 = vrot.lane.b32.xlu1 %v2687_v50, %s2449_s29  ;;  %v2725_v13 = vmul.f32 %v2685_v7, %v2703_v2  ;;  %v2728_v14 = vmul.f32 %v1129_v11, %v2703_v2  ;;  %v2731_v15 = vmul.f32 %v2410_v8, %v2705_v3  ;;  %v2806_v50 = vpop.permute.xlu0 %2417  ;;  %v1850_v51 = vld [vmem:[%s3236_s6] sm:$0xff] }
 0x2b2   : > { %v1474_v16 = vpack.c.bf16 %v2705_v3, %v2703_v2  ;;  %v1294_v40 = vmul.f32 %v2669_v33, %v2703_v2  ;;  %v1244_v7 = vmul.f32 %v2671_v34, %v2703_v2  ;;  %v1188_v33 = vmul.f32 %v2673_v35, %v2705_v3 }
 0x2b3   : > { %1253 = vrot.lane.b32.xlu0 %v1241_v10, %s2444_s20  ;;  %v1138_v34 = vmul.f32 %v2701_v62, %v2705_v3  ;;  %v1051_v35 = vmul.f32 %v1043_v17, %v2703_v2  ;;  %v1380_v48 = vmul.f32 %v2414_v41, %v2703_v2  ;;  %v1381_v49 = vmul.f32 %v1373_v9, %v2705_v3 }
 0x2b4   : > { %v1501_v20 = vunpack.c.l.bf16 %v1474_v16  ;;  %v1502_v21 = vunpack.c.h.bf16 %v1474_v16  ;;  %v1678_v22 = vunpack.c.h.b16 %v1474_v16  ;;  %v1677_v23 = vunpack.c.l.b16 %v1474_v16 }
 0x2b5   : > { %v1295_v52 = vmul.f32 %v2677_v36, %v2705_v3  ;;  %v2056_v36 = vld [vmem:[%s3238_s8 + $0x10] sm:$0xff]  ;;  %v1245_v59 = vmul.f32 %v2681_v6, %v2705_v3  ;;  %v2419_v39 = vunpack.i.l.bf16 %v2806_v50 }
 0x2b6   : > { %v2741_v26 = vsub.f32 %v2703_v2, %v1501_v20  ;;  %v2744_v27 = vsub.f32 %v2705_v3, %v1502_v21  ;;  %v2746_v28 = vpack.c.b16 %v1678_v22, %v1676_v18  ;;  %v2748_v29 = vpack.c.b16 %v1677_v23, %v1675_v19  ;;  %v2057_v22 = vld [vmem:[%s3238_s8 + $0x18] sm:$0xff] }
 0x2b7   : > { %v2816_v54 = vpop.permute.xlu2 %1257 }
 0x2b8   : > { %v1563_v31 = vpack.c.bf16 %v2741_v26, %v2708_v4  ;;  %v1564_v32 = vpack.c.bf16 %v2744_v27, %v2711_v5 }
 0x2b9   : > { %1305 = vrot.lane.b32.xlu1 %v1292_v24, %s2446_s22  ;;  %1199 = vrot.lane.b32.xlu2 %v1185_v25, %s2447_s23  ;;  %v2822_v57 = vpop.permute.xlu0 %1195 }
 0x2bb   : > { %1061 = vrot.lane.b32.xlu0 %v1048_v30, %s2448_s24 }
 0x2bf   : > { %v2828_v58 = vpop.permute.xlu2 %1263 }
 0x2c1   : > { %1255 = vrot.lane.b32.xlu1 %v1242_v37, %s2444_s20  ;;  %1149 = vrot.lane.b32.xlu2 %v1135_v1, %s2445_s21  ;;  %v2832_v60 = vpop.permute.xlu0 %1201 }
 0x2c3   : > { %1103 = vrot.lane.b32.xlu0 %v2703_v2, %s2449_s29 }
 0x2c7   : > { %v2835_v61 = vpop.permute.xlu2 %1059 }
 0x2c9   : > { %1347 = vrot.lane.b32.xlu2 %v2705_v3, %s2450_s30  ;;  %1197 = vrot.lane.b32.xlu1 %v1184_v38, %s2447_s23  ;;  %v2839_v62 = vpop.permute.xlu0 %1145 }
 0x2cb   : > { %1309 = vrot.lane.b32.xlu0 %v1294_v40, %s2446_s22 }
 0x2cf   : > { %v2841_v63 = vpop.permute.xlu2 %1065 }
 0x2d1   : > { %1389 = vrot.lane.b32.xlu2 %v1377_v42, %s2443_s19  ;;  %1147 = vrot.lane.b32.xlu1 %v1134_v43, %s2445_s21  ;;  %v2845_v0 = vpop.permute.xlu0 %1151 }
 0x2d3   : > { %1259 = vrot.lane.b32.xlu0 %v1244_v7, %s2444_s20  ;;  %v2420_v7 = vunpack.i.h.bf16 %v2806_v50 }
 0x2d9   : > { %1205 = vrot.lane.b32.xlu2 %v1188_v33, %s2447_s23  ;;  %1063 = vrot.lane.b32.xlu1 %v1049_v12, %s2448_s24 }
 0x2db   : > { %1391 = vrot.lane.b32.xlu0 %v1378_v45, %s2443_s19 }
 0x2e1   : > { %1155 = vrot.lane.b32.xlu2 %v1138_v34, %s2445_s21  ;;  %1345 = vrot.lane.b32.xlu1 %v2703_v2, %s2450_s30 }
 0x2e3   : > { %1067 = vrot.lane.b32.xlu0 %v1051_v35, %s2448_s24 }
 0x2e9   : > { %1395 = vrot.lane.b32.xlu2 %v1380_v48, %s2443_s19  ;;  %1105 = vrot.lane.b32.xlu1 %v2705_v3, %s2449_s29  ;;  %v2423_v3 = vpop.permute.xlu0 %2422 }
 0x2ea   : > { %v2424_v8 = vunpack.i.l.bf16 %v2423_v3 }
 0x2eb   : > { %1397 = vrot.lane.b32.xlu0 %v1381_v49, %s2443_s19 }
 0x2f1   : > { %1854 = vperm.xlu2 %2385, %v1850_v51   ;;  %1311 = vrot.lane.b32.xlu1 %v1295_v52, %s2446_s22 }
 0x2f3   : > { %1859 = vperm.xlu0 %2383, %v1851_v53   ;;  %v2425_v53 = vunpack.i.h.bf16 %v2423_v3 }
 0x2f9   : > { %2065 = vperm.xlu2 %2385, %v2055_v56   ;;  %1393 = vrot.lane.b32.xlu1 %v1379_v55, %s2443_s19 }
 0x2fb   : > { %2070 = vperm.xlu0 %2383, %v2056_v36  }
 0x301   : > { %1261 = vrot.lane.b32.xlu1 %v1245_v59, %s2444_s20 }
 0x303   : > { %v1342_v2 = vpop.permute.xlu2 %1341 }
 0x304   : > { %v1352_v42 = vsel %vm667_vm12, %v1342_v2, %v2419_v39 }
 0x309   : > { %1203 = vrot.lane.b32.xlu1 %v2725_v13, %s2447_s23 }
 0x30b   : > { %v1100_v10 = vpop.permute.xlu2 %1099 }
 0x311   : > { %1153 = vrot.lane.b32.xlu1 %v2728_v14, %s2445_s21  ;;  %v2054_v14 = vld [vmem:[%s3238_s8] sm:$0xff] }
 0x313   : > { %v2870_v30 = vpop.permute.xlu2 %1199 }
 0x319   : > { %1069 = vrot.lane.b32.xlu1 %v2731_v15, %s2448_s24 }
 0x31b   : > { %v1340_v6 = vpop.permute.xlu1 %1339  ;;  %v2876_v38 = vpop.permute.xlu2 %1149 }
 0x31c   : > { %v1351_v41 = vsel %vm667_vm12, %v1340_v6, %v1342_v2 }
 0x31d   : > { %v1304_v24 = vpop.permute.xlu0 %1303  ;;  %v2886_v44 = vpack.c.bf16 %v1352_v42, %v1351_v41 }
 0x31f   : > { %v1511_v12 = vunpack.c.l.bf16 %v2886_v44  ;;  %v1512_v35 = vunpack.c.h.bf16 %v2886_v44  ;;  %v1687_v50 = vunpack.c.l.b16 %v2886_v44 }
 0x321   : > { %1399 = vrot.lane.b32.xlu1 %v1379_v55, %s2443_s19  ;;  %v1547_v55 = vsub.f32 %v1351_v41, %v1511_v12  ;;  %v1548_v59 = vsub.f32 %v1352_v42, %v1512_v35  ;;  %s2363_s19 = sshll.u32 %s3243_s18, 6 }
 0x322   : > { %s386_s24 = scalar_lea.vmem %s3241_s11, %s2363_s19 }
 0x323   : > { %v1098_v11 = vpop.permute.xlu1 %1097  ;;  %v1348_v9 = vpop.permute.xlu2 %1347 }
 0x324   : > { %v1107_v13 = vsel %vm487_vm11, %v2424_v8, %v1098_v11  ;;  %v1108_v16 = vsel %vm487_vm11, %v1098_v11, %v1100_v10  ;;  %v1354_v45 = vsel %vm667_vm12, %v1348_v9, %v2420_v7 }
 0x325   : > { %v2852_v17 = vpack.c.bf16 %v1108_v16, %v1107_v13  ;;  %v2874_v1 = vpop.permute.xlu0 %1253 }
 0x327   : > { %v1487_v18 = vunpack.c.l.bf16 %v2852_v17  ;;  %v1488_v15 = vunpack.c.h.bf16 %v2852_v17 }
 0x329   : > { %v2859_v19 = vsub.f32 %v1107_v13, %v1487_v18  ;;  %v2861_v20 = vsub.f32 %v1108_v16, %v1488_v15  ;;  %2060 = vperm.xlu1 %2384, %v2054_v14   ;;  %v1664_v15 = vunpack.c.h.b16 %v2852_v17 }
 0x32b   : > { %v1306_v21 = vpop.permute.xlu1 %1305 }
 0x32c   : > { %v1315_v14 = vsel %vm503_vm6, %v1304_v24, %v1306_v21  ;;  %v1316_v18 = vsel %vm503_vm6, %v1306_v21, %v2789_v46 }
 0x32d   : > { %v2883_v43 = vpop.permute.xlu0 %1061 }
 0x32e   : > { %v1071_v5 = vsel %vm461_vm10, %v2835_v61, %v2883_v43  ;;  %v3007_v61 = vld [vmem:[%s3235_s5 + $0x8] sm:$0xff] }
 0x331   : > { %2075 = vperm.xlu1 %2384, %v2057_v22   ;;  %v1663_v22 = vunpack.c.l.b16 %v2852_v17 }
 0x333   : > { %v2866_v23 = vpop.permute.xlu1 %1255 }
 0x335   : > { %v1104_v56 = vpop.permute.xlu0 %1103 }
 0x336   : > { %v1109_v13 = vsel %vm487_vm11, %v2425_v53, %v1104_v56 }
 0x33b   : > { %v2868_v25 = vpop.permute.xlu1 %1197 }
 0x33d   : > { %v1310_v21 = vpop.permute.xlu0 %1309 }
 0x343   : > { %v2872_v37 = vpop.permute.xlu1 %1147 }
 0x34b   : > { %v2879_v40 = vpop.permute.xlu1 %1063 }
 0x353   : > { %v1346_v33 = vpop.permute.xlu1 %1345 }
 0x354   : > { %v1353_v34 = vsel %vm667_vm12, %v1346_v33, %v1348_v9  ;;  %v2907_v9 = vpack.c.bf16 %v1316_v18, %v1315_v14 }
 0x355   : > { %v2892_v48 = vpack.c.bf16 %v1354_v45, %v1353_v34 }
 0x357   : > { %v1513_v49 = vunpack.c.l.bf16 %v2892_v48  ;;  %v1514_v51 = vunpack.c.h.bf16 %v2892_v48  ;;  %v1689_v52 = vunpack.c.l.b16 %v2892_v48 }
 0x359   : > { %v1549_v36 = vsub.f32 %v1353_v34, %v1513_v49  ;;  %v1550_v2 = vsub.f32 %v1354_v45, %v1514_v51  ;;  %v2898_v6 = vpack.c.b16 %v1689_v52, %v1687_v50  ;;  %v1507_v51 = vunpack.c.l.bf16 %v2907_v9 }
 0x35a   : > { %v1508_v50 = vunpack.c.h.bf16 %v2907_v9 }
 0x35b   : > { %v1569_v8 = vpack.c.bf16 %v1549_v36, %v1547_v55  ;;  %v1106_v10 = vpop.permute.xlu1 %1105  ;;  %v1570_v11 = vpack.c.bf16 %v1550_v2, %v1548_v59 }
 0x35c   : > { %v1110_v16 = vsel %vm487_vm11, %v1104_v56, %v1106_v10  ;;  %v1543_v56 = vsub.f32 %v1315_v14, %v1507_v51  ;;  %v1544_v36 = vsub.f32 %v1316_v18, %v1508_v50  ;;  %v1260_v18 = vpop.permute.xlu0 %1259 }
 0x35d   : > { %v1468_v3 = vpack.c.bf16 %v1110_v16, %v1109_v13  ;;  %1585 = vmatpush.bf16.msrb.mxu0 %v1569_v8  ;;  %1613 = vmatpush.bf16.msrb.mxu2 %v1570_v11 }
 0x35f   : > { %v1490_v39 = vunpack.c.h.bf16 %v1468_v3  ;;  %v1489_v41 = vunpack.c.l.bf16 %v1468_v3  ;;  %v1666_v42 = vunpack.c.h.b16 %v1468_v3  ;;  %v1665_v7 = vunpack.c.l.b16 %v1468_v3 }
 0x361   : > { %v2909_v33 = vsub.f32 %v1110_v16, %v1490_v39  ;;  %v2911_v12 = vsub.f32 %v1109_v13, %v1489_v41  ;;  %v2913_v24 = vpack.c.b16 %v1666_v42, %v1664_v15  ;;  %v2915_v46 = vpack.c.b16 %v1665_v7, %v1663_v22  ;;  %v2938_v16 = vpop.permute.xlu2 %1389 }
 0x362   : > { %v1266_v13 = vsel %vm540_vm7, %v2866_v23, %v2816_v54  ;;  %v1207_v54 = vsel %vm563_vm8, %v2822_v57, %v2868_v25 }
 0x363   : > { %v1312_v45 = vpop.permute.xlu1 %1311  ;;  %v1557_v34 = vpack.c.bf16 %v2911_v12, %v2859_v19  ;;  %v1558_v17 = vpack.c.bf16 %v2909_v33, %v2861_v20 }
 0x364   : > { %v1317_v35 = vsel %vm503_vm6, %v1310_v21, %v1312_v45  ;;  %v1318_v49 = vsel %vm503_vm6, %v1312_v45, %v2798_v47  ;;  %v1265_v47 = vsel %vm540_vm7, %v2874_v1, %v2866_v23  ;;  %v1208_v23 = vsel %vm563_vm8, %v2868_v25, %v2870_v30 }
 0x365   : > { %v2926_v52 = vpack.c.bf16 %v1318_v49, %v1317_v35  ;;  %v2940_v14 = vpack.c.bf16 %v1266_v13, %v1265_v47  ;;  %v2957_v21 = vpack.c.bf16 %v1208_v23, %v1207_v54 }
 0x367   : > { %v1509_v53 = vunpack.c.l.bf16 %v2926_v52  ;;  %v1510_v55 = vunpack.c.h.bf16 %v2926_v52  ;;  %v1503_v15 = vunpack.c.l.bf16 %v2940_v14  ;;  %v1504_v1 = vunpack.c.h.bf16 %v2940_v14 }
 0x368   : > { %v1496_v25 = vunpack.c.h.bf16 %v2957_v21 }
 0x369   : > { %v1545_v59 = vsub.f32 %v1317_v35, %v1509_v53  ;;  %v1546_v2 = vsub.f32 %v1318_v49, %v1510_v55  ;;  %v1539_v45 = vsub.f32 %v1265_v47, %v1503_v15  ;;  %v1206_v35 = vpop.permute.xlu2 %1205  ;;  %v1495_v55 = vunpack.c.l.bf16 %v2957_v21 }
 0x36b   : > { %v2930_v8 = vpop.permute.xlu1 %1393  ;;  %v1567_v10 = vpack.c.bf16 %v1545_v59, %v1543_v56  ;;  %v1568_v11 = vpack.c.bf16 %v1546_v2, %v1544_v36  ;;  %v1392_v36 = vpop.permute.xlu0 %1391  ;;  %v1157_v2 = vsel %vm526_vm9, %v2839_v62, %v2872_v37 }
 0x36d   : > { %1586 = vmatpush.bf16.msrb.mxu0 %v1567_v10  ;;  %1614 = vmatpush.bf16.msrb.mxu2 %v1568_v11  ;;  %v1158_v10 = vsel %vm526_vm9, %v2872_v37, %v2876_v38 }
 0x371   : > { %v1156_v62 = vpop.permute.xlu2 %1155 }
 0x373   : > { %v1262_v3 = vpop.permute.xlu1 %1261 }
 0x374   : > { %v1267_v22 = vsel %vm540_vm7, %v1260_v18, %v1262_v3  ;;  %v1268_v39 = vsel %vm540_vm7, %v1262_v3, %v2828_v58  ;;  %v1540_v58 = vsub.f32 %v1266_v13, %v1504_v1  ;;  %v1532_v13 = vsub.f32 %v1208_v23, %v1496_v25  ;;  %v3002_v23 = vld [vmem:[%s3235_s5] sm:$0xff] }
 0x375   : > { %v2953_v41 = vpack.c.bf16 %v1268_v39, %v1267_v22  ;;  %v2974_v18 = vpack.c.bf16 %v1158_v10, %v1157_v2 }
 0x377   : > { %v1505_v42 = vunpack.c.l.bf16 %v2953_v41  ;;  %v1506_v7 = vunpack.c.h.bf16 %v2953_v41  ;;  %v1491_v4 = vunpack.c.l.bf16 %v2974_v18  ;;  %v1492_v26 = vunpack.c.h.bf16 %v2974_v18 }
 0x379   : > { %v1541_v49 = vsub.f32 %v1267_v22, %v1505_v42  ;;  %v1542_v51 = vsub.f32 %v1268_v39, %v1506_v7  ;;  %v1072_v39 = vsel %vm461_vm10, %v2883_v43, %v2879_v40  ;;  %v1527_v42 = vsub.f32 %v1157_v2, %v1491_v4  ;;  %v3012_v43 = vld [vmem:[%s3235_s5 + $0x10] sm:$0xff] }
 0x37a   : > { %v2995_v27 = vpack.c.bf16 %v1072_v39, %v1071_v5  ;;  %v1528_v7 = vsub.f32 %v1158_v10, %v1492_v26  ;;  %v1401_v10 = vsel %vm441_vm5, %v2938_v16, %v1392_v36 }
 0x37b   : > { %v1204_v50 = vpop.permute.xlu1 %1203  ;;  %v1565_v53 = vpack.c.bf16 %v1541_v49, %v1539_v45  ;;  %v1566_v57 = vpack.c.bf16 %v1542_v51, %v1540_v58 }
 0x37c   : > { %v1209_v30 = vsel %vm563_vm8, %v2832_v60, %v1204_v50  ;;  %v1210_v56 = vsel %vm563_vm8, %v1204_v50, %v1206_v35  ;;  %v1531_v60 = vsub.f32 %v1207_v54, %v1495_v55  ;;  %v3017_v35 = vld [vmem:[%s3235_s5 + $0x18] sm:$0xff]  ;;  %v1484_v49 = vunpack.c.h.bf16 %v2995_v27 }
 0x37d   : > { %v2964_v59 = vpack.c.bf16 %v1210_v56, %v1209_v30  ;;  %1587 = vmatpush.bf16.msrb.mxu0 %v1565_v53  ;;  %1615 = vmatpush.bf16.msrb.mxu2 %v1566_v57  ;;  %v1402_v55 = vsel %vm441_vm5, %v1392_v36, %v2930_v8 }
 0x37e   : > { %v1481_v8 = vpack.c.bf16 %v1402_v55, %v1401_v10 }
 0x37f   : > { %v1497_v11 = vunpack.c.l.bf16 %v2964_v59  ;;  %v1498_v47 = vunpack.c.h.bf16 %v2964_v59 }
 0x380   : > { %v1515_v12 = vunpack.c.l.bf16 %v1481_v8 }
 0x381   : > { %v1533_v3 = vsub.f32 %v1209_v30, %v1497_v11  ;;  %v1534_v15 = vsub.f32 %v1210_v56, %v1498_v47  ;;  %1588 = vmatpush.bf16.msrb.mxu0 %v1563_v31  ;;  %1616 = vmatpush.bf16.msrb.mxu2 %v1564_v32  ;;  %v1068_v32 = vpop.permute.xlu0 %1067  ;;  %v3027_v30 = vpack.c.bf16 %v3007_v61, %v3002_v23 }
 0x382   : > { %v1073_v51 = vsel %vm461_vm10, %v2841_v63, %v1068_v32  ;;  %v3031_v56 = vpack.c.bf16 %v3017_v35, %v3012_v43  ;;  %v1483_v63 = vunpack.c.l.bf16 %v2995_v27 }
 0x383   : > { %v1154_v37 = vpop.permute.xlu1 %1153  ;;  %v1561_v38 = vpack.c.bf16 %v1533_v3, %v1531_v60  ;;  %v1562_v22 = vpack.c.bf16 %v1534_v15, %v1532_v13  ;;  %v1690_v60 = vunpack.c.h.b16 %v2892_v48  ;;  %v1520_v13 = vsub.f32 %v1072_v39, %v1484_v49  ;;  %v1396_v39 = vpop.permute.xlu2 %1395 }
 0x384   : > { %v1159_v1 = vsel %vm526_vm9, %v2845_v0, %v1154_v37  ;;  %v1160_v54 = vsel %vm526_vm9, %v1154_v37, %v1156_v62  ;;  %v1575_v3 = vunpack.c.l.b16 %v3027_v30  ;;  %v1577_v15 = vunpack.c.l.b16 %v3031_v56 }
 0x385   : > { %v2990_v31 = vpack.c.bf16 %v1160_v54, %v1159_v1  ;;  %1589 = vmatpush.bf16.msrb.mxu0 %v1561_v38  ;;  %1617 = vmatpush.bf16.msrb.mxu2 %v1562_v22  ;;  %v1519_v16 = vsub.f32 %v1071_v5, %v1483_v63  ;;  %v1688_v38 = vunpack.c.h.b16 %v2886_v44  ;;  %v1684_v48 = vunpack.c.h.b16 %v2907_v9 }
 0x386   : > { %v1686_v22 = vunpack.c.h.b16 %v2926_v52  ;;  %v3054_v33 = vpack.c.b16 %v1577_v15, %v1575_v3  ;;  %v1578_v49 = vunpack.c.h.b16 %v3031_v56  ;;  %v1681_v15 = vunpack.c.l.b16 %v2953_v41 }
 0x387   : > { %v1493_v40 = vunpack.c.l.bf16 %v2990_v31  ;;  %v1494_v0 = vunpack.c.h.bf16 %v2990_v31 }
 0x388   : > { %v1708_v44 = vpack.c.b16 %v1686_v22, %v1684_v48  ;;  %v1669_v22 = vunpack.c.l.b16 %v2990_v31 }
 0x389   : > { %v1529_v45 = vsub.f32 %v1159_v1, %v1493_v40  ;;  %v1530_v58 = vsub.f32 %v1160_v54, %v1494_v0  ;;  %v1398_v62 = vpop.permute.xlu0 %1397  ;;  %v1516_v1 = vunpack.c.h.bf16 %v1481_v8 }
 0x38a   : > { %v1403_v19 = vsel %vm441_vm5, %v1396_v39, %v1398_v62 }
 0x38b   : > { %v1070_v50 = vpop.permute.xlu1 %1069  ;;  %v1559_v53 = vpack.c.bf16 %v1529_v45, %v1527_v42  ;;  %v1560_v57 = vpack.c.bf16 %v1530_v58, %v1528_v7  ;;  %v1552_v5 = vsub.f32 %v1402_v55, %v1516_v1  ;;  %v1551_v7 = vsub.f32 %v1401_v10, %v1515_v12 }
 0x38c   : > { %v1074_v25 = vsel %vm461_vm10, %v1068_v32, %v1070_v50  ;;  %v1710_v32 = vpack.c.b16 %v1690_v60, %v1688_v38  ;;  %v1576_v58 = vunpack.c.h.b16 %v3027_v30  ;;  %v1691_v55 = vunpack.c.l.b16 %v1481_v8 }
 0x38d   : > { %v3033_v2 = vpack.c.bf16 %v1074_v25, %v1073_v51  ;;  %1590 = vmatpush.bf16.msrb.mxu0 %v1559_v53  ;;  %1618 = vmatpush.bf16.msrb.mxu2 %v1560_v57  ;;  %v1682_v57 = vunpack.c.h.b16 %v2953_v41  ;;  %v1680_v10 = vunpack.c.h.b16 %v2940_v14  ;;  %v1685_v60 = vunpack.c.l.b16 %v2926_v52 }
 0x38e   : > { %v1674_v52 = vunpack.c.h.b16 %v2964_v59  ;;  %v1673_v41 = vunpack.c.l.b16 %v2964_v59  ;;  %v1671_v38 = vunpack.c.l.b16 %v2957_v21  ;;  %v1660_v59 = vunpack.c.h.b16 %v2995_v27 }
 0x38f   : > { %v1486_v11 = vunpack.c.h.bf16 %v3033_v2  ;;  %v1485_v47 = vunpack.c.l.bf16 %v3033_v2  ;;  %v1662_v39 = vunpack.c.h.b16 %v3033_v2  ;;  %v1455_v1 = vunpack.c.l.bf16 %v3027_v30 }
 0x390   : > { %v1701_v48 = vpack.c.b16 %v1673_v41, %v1671_v38 }
 0x391   : > { %v1522_v37 = vsub.f32 %v1074_v25, %v1486_v11  ;;  %1591 = vmatpush.bf16.msrb.mxu0 %v1557_v34  ;;  %1619 = vmatpush.bf16.msrb.mxu2 %v1558_v17  ;;  %v1521_v36 = vsub.f32 %v1073_v51, %v1485_v47  ;;  %v1692_v17 = vunpack.c.h.b16 %v1481_v8  ;;  %v1580_v47 = vpack.c.b16 %v1578_v49, %v1576_v58 }
 0x392   : > { %v1683_v8 = vunpack.c.l.b16 %v2907_v9  ;;  %v1672_v9 = vunpack.c.h.b16 %v2957_v21  ;;  %v1457_v21 = vunpack.c.l.bf16 %v3031_v56 }
 0x393   : > { %v1400_v54 = vpop.permute.xlu1 %1399  ;;  %v1555_v4 = vpack.c.bf16 %v1521_v36, %v1519_v16  ;;  %v1556_v26 = vpack.c.bf16 %v1522_v37, %v1520_v13  ;;  %v1706_v13 = vpack.c.b16 %v1682_v57, %v1680_v10  ;;  %v1670_v36 = vunpack.c.h.b16 %v2990_v31 }
 0x394   : > { %v1404_v20 = vsel %vm441_vm5, %v1398_v62, %v1400_v54  ;;  %v1707_v3 = vpack.c.b16 %v1685_v60, %v1683_v8  ;;  %v1679_v62 = vunpack.c.l.b16 %v2940_v14  ;;  %v1702_v16 = vpack.c.b16 %v1674_v52, %v1672_v9  ;;  %v1855_v9 = vpop.permute.xlu2 %1854 }
 0x395   : > { %v1482_v34 = vpack.c.bf16 %v1404_v20, %v1403_v19  ;;  %1592 = vmatpush.bf16.msrb.mxu0 %v1555_v4  ;;  %1620 = vmatpush.bf16.msrb.mxu2 %v1556_v26  ;;  %v1696_v31 = vpack.c.b16 %v1662_v39, %v1660_v59  ;;  %v1661_v4 = vunpack.c.l.b16 %v3033_v2  ;;  %v1659_v26 = vunpack.c.l.b16 %v2995_v27 }
 0x396   : > { %v1705_v37 = vpack.c.b16 %v1681_v15, %v1679_v62 }
 0x397   : > { %v1517_v40 = vunpack.c.l.bf16 %v1482_v34  ;;  %v1518_v0 = vunpack.c.h.bf16 %v1482_v34  ;;  %v1694_v42 = vunpack.c.h.b16 %v1482_v34  ;;  %v1693_v45 = vunpack.c.l.b16 %v1482_v34 }
 0x398   : > { %1621 = vmatmul.bf16.vlgmr.msrb.gmra.mxu2 %v3054_v33  ;;  %1593 = vmatmul.bf16.vlgmr.msrb.gmra.mxu0 %v3054_v33 }
 0x399   : > { %1759 = vmatpush.bf16.msra.mxu0 %v1710_v32  ;;  %v1554_v51 = vsub.f32 %v1404_v20, %v1518_v0  ;;  %v3060_v50 = vpack.c.b16 %v1694_v42, %v1692_v17  ;;  %v1553_v53 = vsub.f32 %v1403_v19, %v1517_v40  ;;  %v3065_v11 = vpack.c.b16 %v1693_v45, %v1691_v55 }
 0x39a   : > { %v1695_v19 = vpack.c.b16 %v1661_v4, %v1659_v26 }
 0x39b   : > { %v1572_v25 = vpack.c.bf16 %v1554_v51, %v1552_v5  ;;  %1780 = vmatpush.bf16.msra.mxu2 %v3060_v50  ;;  %v1571_v63 = vpack.c.bf16 %v1553_v53, %v1551_v7 }
 0x39d   : > { %1760 = vmatpush.bf16.msra.mxu0 %v1708_v44  ;;  %1606 = vmatpush.bf16.msrb.mxu1 %v1571_v63 }
 0x39e   : > { %1634 = vmatpush.bf16.msrb.mxu3 %v1572_v25 }
 0x39f   : > { %1818 = vmatpush.bf16.msrb.mxu2 %v1710_v32 }
 0x3a0   : > { %2342 = vmatmul.msk.bf16.vlgmr.msrb.gmra.mxu1 %vm487_vm11, %v1580_v47 }
 0x3a1   : > { %1731 = vmatpush.bf16.msra.mxu1 %v2898_v6  ;;  %1761 = vmatpush.bf16.msra.mxu0 %v1706_v13 }
 0x3a2   : > { %1752 = vmatpush.bf16.msra.mxu3 %v3065_v11 }
 0x3a3   : > { %2343 = vmatmul.msk.bf16.vlgmr.msrb.gmra.mxu3 %vm487_vm11, %v1580_v47  ;;  %1819 = vmatpush.bf16.msrb.mxu2 %v1708_v44 }
 0x3a5   : > { %1732 = vmatpush.bf16.msra.mxu1 %v1707_v3  ;;  %1762 = vmatpush.bf16.msra.mxu0 %v2746_v28 }
 0x3a6   : > { %1790 = vmatpush.bf16.msrb.mxu3 %v2898_v6  ;;  %v1668_v6 = vunpack.c.h.b16 %v2974_v18 }
 0x3a7   : > { %1820 = vmatpush.bf16.msrb.mxu2 %v1706_v13 }
 0x3a8   : > { %v1700_v14 = vpack.c.b16 %v1670_v36, %v1668_v6  ;;  %2345 = vmatmul.msk.bf16.vlgmr.msra.gmra.mxu2 %vm487_vm11, %v1580_v47 }
 0x3a9   : > { %1733 = vmatpush.bf16.msra.mxu1 %v1705_v37  ;;  %1763 = vmatpush.bf16.msra.mxu0 %v1702_v16 }
 0x3aa   : > { %1791 = vmatpush.bf16.msrb.mxu3 %v1707_v3 }
 0x3ab   : > { %1821 = vmatpush.bf16.msrb.mxu2 %v2746_v28  ;;  %v1667_v28 = vunpack.c.l.b16 %v2974_v18  ;;  %v1461_v18 = vsub.f32 %v3012_v43, %v1457_v21  ;;  %v1458_v43 = vunpack.c.h.bf16 %v3031_v56 }
 0x3ad   : > { %1734 = vmatpush.bf16.msra.mxu1 %v2748_v29  ;;  %1764 = vmatpush.bf16.msra.mxu0 %v1700_v14  ;;  %v1699_v54 = vpack.c.b16 %v1669_v22, %v1667_v28  ;;  %v1462_v27 = vsub.f32 %v3017_v35, %v1458_v43  ;;  %v1860_v28 = vpop.permute.xlu0 %1859 }
 0x3ae   : > { %1792 = vmatpush.bf16.msrb.mxu3 %v1705_v37 }
 0x3af   : > { %1822 = vmatpush.bf16.msrb.mxu2 %v1702_v16 }
 0x3b1   : > { %1735 = vmatpush.bf16.msra.mxu1 %v1701_v48  ;;  %1765 = vmatpush.bf16.msra.mxu0 %v2913_v24 }
 0x3b2   : > { %1793 = vmatpush.bf16.msrb.mxu3 %v2748_v29  ;;  %v1459_v29 = vsub.f32 %v3002_v23, %v1455_v1  ;;  %v1456_v23 = vunpack.c.h.bf16 %v3027_v30 }
 0x3b3   : > { %2344 = vmatmul.msk.bf16.vlgmr.msra.gmra.mxu3 %vm487_vm11, %v1580_v47  ;;  %1823 = vmatpush.bf16.msrb.mxu2 %v1700_v14 }
 0x3b4   : > { %v1463_v32 = vpack.c.bf16 %v1461_v18, %v1459_v29 }
 0x3b5   : > { %1736 = vmatpush.bf16.msra.mxu1 %v1699_v54  ;;  %1766 = vmatpush.bf16.msra.mxu0 %v1696_v31 }
 0x3b6   : > { %1794 = vmatpush.bf16.msrb.mxu3 %v1701_v48 }
 0x3b7   : > { %1824 = vmatpush.bf16.msrb.mxu2 %v2913_v24  ;;  %v1460_v24 = vsub.f32 %v3007_v61, %v1456_v23 }
 0x3b8   : > { %1767 = vmatmul.bf16.vlgmr.msra.gmra.mxu0 %v3054_v33 }
 0x3b9   : > { %1839 = vmatpush.bf16.msrb.mxu0 %v3060_v50  ;;  %1737 = vmatpush.bf16.msra.mxu1 %v2915_v46  ;;  %v1464_v2 = vpack.c.bf16 %v1462_v27, %v1460_v24 }
 0x3ba   : > { %1795 = vmatpush.bf16.msrb.mxu3 %v1699_v54  ;;  %v1870_v54 = vld [vmem:[%s3237_s7] sm:$0xff] }
 0x3bb   : > { %1825 = vmatpush.bf16.msrb.mxu2 %v1696_v31  ;;  %v1871_v31 = vld [vmem:[%s3237_s7 + $0x8] sm:$0xff]  ;;  %v1874_v4 = vpack.c.bf16 %v1870_v54, %v1870_v54 }
 0x3bc   : > { %v1875_v26 = vpack.c.bf16 %v1871_v31, %v1871_v31 }
 0x3bd   : > { %1738 = vmatpush.bf16.msra.mxu1 %v1695_v19 }
 0x3be   : > { %1796 = vmatpush.bf16.msrb.mxu3 %v2915_v46  ;;  %1826 = vmatmul.bf16.vlgmr.msrb.gmra.mxu2 %v1463_v32 }
 0x3c0   : > { %1739 = vmatmul.bf16.vlgmr.msra.gmra.mxu1 %v3054_v33 }
 0x3c1   : > { %1811 = vmatpush.bf16.msrb.mxu1 %v3065_v11 }
 0x3c2   : > { %1797 = vmatpush.bf16.msrb.mxu3 %v1695_v19 }
 0x3c5   : > { %1798 = vmatmul.bf16.vlgmr.msrb.gmra.mxu3 %v1463_v32 }
 0x3c8   : > { %2347 = vmatmul.msk.bf16.vlgmr.msrb.gmra.mxu0 %vm487_vm11, %v1464_v2 }
 0x3d0   : > { %2346 = vmatmul.msk.bf16.vlgmr.msrb.gmra.mxu1 %vm487_vm11, %v1464_v2 }
 0x415   : > { %v1594_v30 = vpop.f32.mrf.mxu0 }
 0x41b   : > { %v1622_v46 = vpop.f32.mrf.mxu2 }
 0x41d   : > { %v1608_v20 = vpop.f32.mrf.mxu1  ;;  %v1596_v34 = vpop.f32.mrf.mxu0 }
 0x41e   : > { %v1609_v51 = vadd.f32 %v1608_v20, %v1594_v30  ;;  %v1905_v30 = vunpack.c.l.b16 %v1875_v26 }
 0x423   : > { %v1624_v56 = vpop.f32.mrf.mxu2 }
 0x425   : > { %v1610_v33 = vpop.f32.mrf.mxu1 }
 0x426   : > { %v1636_v12 = vpop.f32.mrf.mxu3  ;;  %v1611_v15 = vadd.f32 %v1610_v33, %v1596_v34 }
 0x427   : > { %v1637_v49 = vadd.f32 %v1636_v12, %v1622_v46  ;;  %v1904_v46 = vunpack.c.l.b16 %v1874_v4 }
 0x42b   : > { %v1782_v17 = vpop.f32.mrf.mxu2 }
 0x42e   : > { %v1638_v44 = vpop.f32.mrf.mxu3 }
 0x42f   : > { %v1639_v25 = vadd.f32 %v1638_v44, %v1624_v56 }
 0x433   : > { %v1784_v61 = vpop.f32.mrf.mxu2 }
 0x435   : > { %v1768_v5 = vpop.f32.mrf.mxu0 }
 0x436   : > { %v1754_v40 = vpop.f32.mrf.mxu3  ;;  %v1769_v50 = vadd.f32 %v1768_v5, %v1637_v49 }
 0x438   : > { %v1783_v63 = vadd.f32 %v1782_v17, %v1769_v50 }
 0x43d   : > { %v1740_v0 = vpop.f32.mrf.mxu1  ;;  %v1770_v35 = vpop.f32.mrf.mxu0 }
 0x43e   : > { %v1756_v42 = vpop.f32.mrf.mxu3  ;;  %v1741_v53 = vadd.f32 %v1740_v0, %v1609_v51  ;;  %v1771_v60 = vadd.f32 %v1770_v35, %v1639_v25 }
 0x440   : > { %v1755_v47 = vadd.f32 %v1754_v40, %v1741_v53  ;;  %v1785_v37 = vadd.f32 %v1784_v61, %v1771_v60 }
 0x441   : > { %v1827_v7 = vpop.f32.mrf.mxu2 }
 0x445   : > { %v1742_v45 = vpop.f32.mrf.mxu1  ;;  %v1841_v58 = vpop.f32.mrf.mxu0 }
 0x446   : > { %v1842_v57 = vadd.f32 %v1841_v58, %v1827_v7  ;;  %v1743_v16 = vadd.f32 %v1742_v45, %v1611_v15  ;;  %v1872_v7 = vld [vmem:[%s3237_s7 + $0x10] sm:$0xff]  ;;  %v1873_v45 = vld [vmem:[%s3237_s7 + $0x18] sm:$0xff] }
 0x447   : > { %v1876_v58 = vpack.c.bf16 %v1872_v7, %v1872_v7  ;;  %v1877_v49 = vpack.c.bf16 %v1873_v45, %v1873_v45 }
 0x448   : > { %v1799_v55 = vpop.f32.mrf.mxu3  ;;  %v1847_v3 = vadd.f32 %v1842_v57, %v1783_v63  ;;  %v1757_v22 = vadd.f32 %v1756_v42, %v1743_v16  ;;  %v1908_v42 = vpack.c.b16 %v1905_v30, %v1904_v46  ;;  %v1878_v57 = vunpack.c.l.bf16 %v1874_v4 }
 0x449   : > { %v1829_v11 = vpop.f32.mrf.mxu2  ;;  %v1906_v51 = vunpack.c.l.b16 %v1876_v58  ;;  %v1907_v50 = vunpack.c.l.b16 %v1877_v49 }
 0x44a   : > { %v1863_v6 = vadd.f32 %v1855_v9, %v1847_v3  ;;  %v1882_v25 = vsub.f32 %v1870_v54, %v1878_v57 }
 0x44b   : > { %v1909_v53 = vpack.c.b16 %v1907_v50, %v1906_v51 }
 0x44c   : > { %v1867_v59 = vmax.f32 %v1863_v6, 0.0 }
 0x44d   : > { %v1813_v10 = vpop.f32.mrf.mxu1  ;;  %v1843_v8 = vpop.f32.mrf.mxu0 }
 0x44e   : > { %v1814_v13 = vadd.f32 %v1813_v10, %v1799_v55  ;;  %v1844_v62 = vadd.f32 %v1843_v8, %v1829_v11  ;;  %v1879_v55 = vunpack.c.l.bf16 %v1875_v26  ;;  %v1880_v11 = vunpack.c.l.bf16 %v1876_v58 }
 0x450   : > { %v1846_v52 = vadd.f32 %v1814_v13, %v1755_v47  ;;  %v1849_v41 = vadd.f32 %v1844_v62, %v1785_v37  ;;  %v1801_v38 = vpop.f32.mrf.mxu3  ;;  %v1883_v63 = vsub.f32 %v1871_v31, %v1879_v55  ;;  %v1881_v47 = vunpack.c.l.bf16 %v1877_v49 }
 0x451   : > { %v1884_v60 = vsub.f32 %v1872_v7, %v1880_v11 }
 0x452   : > { %v1862_v36 = vadd.f32 %v1855_v9, %v1846_v52  ;;  %v1865_v1 = vadd.f32 %v1860_v28, %v1849_v41  ;;  %v1886_v10 = vpack.c.bf16 %v1883_v63, %v1882_v25  ;;  %v1885_v13 = vsub.f32 %v1873_v45, %v1881_v47 }
 0x454   : > { %v1866_v14 = vmax.f32 %v1862_v36, 0.0  ;;  %v1869_v32 = vmax.f32 %v1865_v1, 0.0  ;;  %v1887_v8 = vpack.c.bf16 %v1885_v13, %v1884_v60 }
 0x455   : > { %v1815_v48 = vpop.f32.mrf.mxu1 }
 0x456   : > { %v1816_v39 = vadd.f32 %v1815_v48, %v1801_v38  ;;  %v1888_v29 = vpack.c.bf16 %v1867_v59, %v1866_v14 }
 0x458   : > { %v1848_v21 = vadd.f32 %v1816_v39, %v1757_v22  ;;  %v1890_v23 = vunpack.c.l.bf16 %v1888_v29  ;;  %v1891_v43 = vunpack.c.h.bf16 %v1888_v29  ;;  %v1956_v27 = vunpack.c.l.b16 %v1888_v29 }
 0x459   : > { %v1957_v2 = vunpack.c.h.b16 %v1888_v29 }
 0x45a   : > { %v1864_v18 = vadd.f32 %v1860_v28, %v1848_v21  ;;  %v1894_v44 = vsub.f32 %v1866_v14, %v1890_v23  ;;  %v1895_v17 = vsub.f32 %v1867_v59, %v1891_v43  ;;  %v2061_v21 = vpop.permute.xlu1 %2060  ;;  %v2066_v43 = vpop.permute.xlu2 %2065 }
 0x45c   : > { %v1868_v19 = vmax.f32 %v1864_v18, 0.0 }
 0x45e   : > { %v1889_v24 = vpack.c.bf16 %v1869_v32, %v1868_v19 }
 0x460   : > { %v1892_v12 = vunpack.c.l.bf16 %v1889_v24  ;;  %v1958_v56 = vunpack.c.l.b16 %v1889_v24  ;;  %v1959_v20 = vunpack.c.h.b16 %v1889_v24  ;;  %v1893_v34 = vunpack.c.h.bf16 %v1889_v24 }
 0x462   : > { %v1896_v33 = vsub.f32 %v1868_v19, %v1892_v12  ;;  %v1960_v5 = vpack.c.b16 %v1958_v56, %v1956_v27  ;;  %v1961_v40 = vpack.c.b16 %v1959_v20, %v1957_v2  ;;  %v1897_v61 = vsub.f32 %v1869_v32, %v1893_v34  ;;  %v2076_v11 = vpop.permute.xlu1 %2075 }
 0x464   : > { %1971 = vmatpush.bf16.msra.mxu0 %v1960_v5  ;;  %1990 = vmatpush.bf16.msra.mxu2 %v1961_v40  ;;  %v1898_v0 = vpack.c.bf16 %v1896_v33, %v1894_v44  ;;  %v1899_v35 = vpack.c.bf16 %v1897_v61, %v1895_v17 }
 0x466   : > { %1923 = vmatpush.bf16.msra.mxu1 %v1898_v0  ;;  %1942 = vmatpush.bf16.msra.mxu3 %v1899_v35  ;;  %v2071_v0 = vpop.permute.xlu0 %2070 }
 0x467   : > { %2354 = vmatmul.msk.bf16.vlgmr.msra.gmra.mxu2 %vm487_vm11, %v1908_v42  ;;  %2352 = vmatmul.msk.bf16.vlgmr.msra.gmra.mxu0 %vm487_vm11, %v1908_v42 }
 0x469   : > { %2348 = vmatmul.msk.bf16.vlgmr.msra.gmra.mxu1 %vm487_vm11, %v1908_v42  ;;  %2350 = vmatmul.msk.bf16.vlgmr.msra.gmra.mxu3 %vm487_vm11, %v1908_v42 }
 0x46a   : > { %2015 = vmatpush.bf16.msrb.mxu1 %v1960_v5  ;;  %2034 = vmatpush.bf16.msrb.mxu3 %v1961_v40 }
 0x477   : > { %2355 = vmatmul.msk.bf16.gmra.mxu2 %vm487_vm11, %v1909_v53  ;;  %2353 = vmatmul.msk.bf16.gmra.mxu0 %vm487_vm11, %v1909_v53 }
 0x479   : > { %2349 = vmatmul.msk.bf16.gmra.mxu1 %vm487_vm11, %v1909_v53  ;;  %2351 = vmatmul.msk.bf16.gmra.mxu3 %vm487_vm11, %v1909_v53 }
 0x489   : > { %2356 = vmatmul.msk.bf16.vlgmr.msrb.gmra.mxu1 %vm487_vm11, %v1886_v10  ;;  %2358 = vmatmul.msk.bf16.vlgmr.msrb.gmra.mxu3 %vm487_vm11, %v1886_v10 }
 0x499   : > { %2357 = vmatmul.msk.bf16.gmra.mxu1 %vm487_vm11, %v1887_v8  ;;  %2359 = vmatmul.msk.bf16.gmra.mxu3 %vm487_vm11, %v1887_v8 }
 0x4e4   : > { %v1973_v36 = vpop.f32.mrf.mxu0 }
 0x4e6   : > { %v1925_v3 = vpop.f32.mrf.mxu1 }
 0x4e7   : > { %v1974_v38 = vadd.f32 %v1973_v36, %v1925_v3 }
 0x4ea   : > { %v1992_v6 = vpop.f32.mrf.mxu2 }
 0x4ec   : > { %v1944_v15 = vpop.f32.mrf.mxu3  ;;  %v1975_v48 = vpop.f32.mrf.mxu0 }
 0x4ed   : > { %v1993_v22 = vadd.f32 %v1992_v6, %v1944_v15 }
 0x4ee   : > { %v1927_v52 = vpop.f32.mrf.mxu1 }
 0x4ef   : > { %v1976_v18 = vadd.f32 %v1975_v48, %v1927_v52 }
 0x4f2   : > { %v1994_v28 = vpop.f32.mrf.mxu2 }
 0x4f4   : > { %v1946_v62 = vpop.f32.mrf.mxu3  ;;  %v1978_v19 = vpop.f32.mrf.mxu0 }
 0x4f5   : > { %v1995_v26 = vadd.f32 %v1994_v28, %v1946_v62 }
 0x4f6   : > { %v1930_v9 = vpop.f32.mrf.mxu1 }
 0x4f7   : > { %v1979_v20 = vadd.f32 %v1978_v19, %v1930_v9 }
 0x4fa   : > { %v1997_v2 = vpop.f32.mrf.mxu2 }
 0x4fc   : > { %v1949_v37 = vpop.f32.mrf.mxu3  ;;  %v1980_v35 = vpop.f32.mrf.mxu0 }
 0x4fd   : > { %v1998_v17 = vadd.f32 %v1997_v2, %v1949_v37 }
 0x4fe   : > { %v1932_v16 = vpop.f32.mrf.mxu1 }
 0x4ff   : > { %v1981_v51 = vadd.f32 %v1980_v35, %v1932_v16 }
 0x502   : > { %v1999_v58 = vpop.f32.mrf.mxu2 }
 0x504   : > { %v1951_v41 = vpop.f32.mrf.mxu3 }
 0x505   : > { %v2000_v57 = vadd.f32 %v1999_v58, %v1951_v41  ;;  %v2186_v58 = vld [vmem:[%s3240_s10] sm:$0xff] }
 0x506   : > { %v2017_v14 = vpop.f32.mrf.mxu1 }
 0x507   : > { %v2046_v39 = vadd.f32 %v2017_v14, %v1974_v38 }
 0x509   : > { %v3136_v31 = vadd.f32 %v2061_v21, %v2046_v39 }
 0x50b   : > { %v2102_v56 = vmul.f32 %v3136_v31, %v3136_v31 }
 0x50c   : > { %v2036_v59 = vpop.f32.mrf.mxu3 }
 0x50d   : > { %v2047_v1 = vadd.f32 %v2036_v59, %v1993_v22 }
 0x50e   : > { %v2019_v54 = vpop.f32.mrf.mxu1 }
 0x50f   : > { %v3138_v29 = vadd.f32 %v2061_v21, %v2047_v1  ;;  %v2048_v32 = vadd.f32 %v2019_v54, %v1976_v18 }
 0x511   : > { %v2086_v4 = vadd.f32 %v3138_v29, %v3136_v31  ;;  %v2103_v27 = vmul.f32 %v3138_v29, %v3138_v29  ;;  %v3144_v30 = vadd.f32 %v2066_v43, %v2048_v32 }
 0x513   : > { %2087 = vadd.xlane.f32.xlu2 %v2086_v4  ;;  %v2110_v44 = vadd.f32 %v2103_v27, %v2102_v56  ;;  %v2104_v45 = vmul.f32 %v3144_v30, %v3144_v30 }
 0x514   : > { %v2038_v23 = vpop.f32.mrf.mxu3 }
 0x515   : > { %v2049_v24 = vadd.f32 %v2038_v23, %v1995_v26 }
 0x516   : > { %v2022_v46 = vpop.f32.mrf.mxu1 }
 0x517   : > { %v3146_v12 = vadd.f32 %v2066_v43, %v2049_v24  ;;  %v2050_v33 = vadd.f32 %v2022_v46, %v1979_v20 }
 0x519   : > { %v2089_v34 = vadd.f32 %v3146_v12, %v3144_v30  ;;  %v2105_v61 = vmul.f32 %v3146_v12, %v3146_v12  ;;  %v3154_v42 = vadd.f32 %v2071_v0, %v2050_v33 }
 0x51b   : > { %2090 = vadd.xlane.f32.xlu0 %v2089_v34  ;;  %2111 = vadd.xlane.f32.xlu2 %v2110_v44  ;;  %v2113_v50 = vadd.f32 %v2105_v61, %v2104_v45  ;;  %v2106_v13 = vmul.f32 %v3154_v42, %v3154_v42 }
 0x51c   : > { %v2041_v5 = vpop.f32.mrf.mxu3 }
 0x51d   : > { %v2051_v40 = vadd.f32 %v2041_v5, %v1998_v17  ;;  %v2178_v17 = vld [vmem:[%s3239_s9] sm:$0xff] }
 0x51e   : > { %v2024_v49 = vpop.f32.mrf.mxu1 }
 0x51f   : > { %v3156_v7 = vadd.f32 %v2071_v0, %v2051_v40  ;;  %v2052_v55 = vadd.f32 %v2024_v49, %v1981_v51 }
 0x521   : > { %v2092_v53 = vadd.f32 %v3156_v7, %v3154_v42  ;;  %v2107_v10 = vmul.f32 %v3156_v7, %v3156_v7  ;;  %v3164_v47 = vadd.f32 %v2076_v11, %v2052_v55 }
 0x523   : > { %2114 = vadd.xlane.f32.xlu0 %v2113_v50  ;;  %2093 = vadd.xlane.f32.xlu1 %v2092_v53  ;;  %v2116_v8 = vadd.f32 %v2107_v10, %v2106_v13  ;;  %v2108_v52 = vmul.f32 %v3164_v47, %v3164_v47 }
 0x524   : > { %v2043_v25 = vpop.f32.mrf.mxu3 }
 0x525   : > { %v2053_v63 = vadd.f32 %v2043_v25, %v2000_v57 }
 0x527   : > { %v3166_v60 = vadd.f32 %v2076_v11, %v2053_v63 }
 0x529   : > { %v2095_v3 = vadd.f32 %v3166_v60, %v3164_v47  ;;  %v2109_v15 = vmul.f32 %v3166_v60, %v3166_v60 }
 0x52b   : > { %2117 = vadd.xlane.f32.xlu1 %v2116_v8  ;;  %2096 = vadd.xlane.f32.xlu2 %v2095_v3  ;;  %v2119_v62 = vadd.f32 %v2109_v15, %v2108_v52  ;;  %v2179_v8 = vld [vmem:[%s3239_s9 + $0x8] sm:$0xff] }
 0x533   : > { %2120 = vadd.xlane.f32.xlu2 %v2119_v62 }
 0x586   : > { %v2088_v9 = vpop.xlane.xlu2 %2087 }
 0x587   : > { %v2098_v37 = vmul.f32 0.00390625, %v2088_v9 }
 0x589   : > { %v2126_v6 = vmul.f32 %v2098_v37, %v2098_v37 }
 0x58e   : > { %v2091_v16 = vpop.xlane.xlu0 %2090  ;;  %v2112_v36 = vpop.xlane.xlu2 %2111 }
 0x58f   : > { %v2122_v41 = vmul.f32 0.00390625, %v2112_v36  ;;  %v3176_v38 = vmul.f32 0.00390625, %v2091_v16 }
 0x591   : > { %v2130_v14 = vsub.f32 %v2122_v41, %v2126_v6  ;;  %v2127_v28 = vmul.f32 %v3176_v38, %v3176_v38 }
 0x593   : > { %v2134_v48 = vadd.f32 1e-05, %v2130_v14 }
 0x595   : > { %2426 = vrsqrt.f32 %v2134_v48  ;;  %vm2144_vm2 = vweird.f32 %v2134_v48 }
 0x596   : > { %v2115_v22 = vpop.xlane.xlu0 %2114  ;;  %v2094_v39 = vpop.xlane.xlu1 %2093 }
 0x597   : > { %v2123_v59 = vmul.f32 0.00390625, %v2115_v22  ;;  %v3180_v18 = vmul.f32 0.00390625, %v2094_v39  ;;  %v2181_v39 = vld [vmem:[%s3239_s9 + $0x18] sm:$0xff] }
 0x599   : > { %v2131_v1 = vsub.f32 %v2123_v59, %v2127_v28  ;;  %v2128_v23 = vmul.f32 %v3180_v18, %v3180_v18  ;;  %v2188_v28 = vld [vmem:[%s3240_s10 + $0x10] sm:$0xff] }
 0x59b   : > { %v2427_v21 = vpop.eup %2426  ;;  %v2135_v54 = vadd.f32 1e-05, %v2131_v1 }
 0x59c   : > { %v2139_v4 = vmul.f32 %v2427_v21, %v2134_v48  ;;  %vm2145_vm1 = vweird.f32 %v2427_v21 }
 0x59d   : > { %2428 = vrsqrt.f32 %v2135_v54  ;;  %vm2146_vm3 = vmor %vm2144_vm2, %vm2145_vm1  ;;  %vm2154_vm5 = vweird.f32 %v2135_v54 }
 0x59e   : > { %v2140_v26 = vmul.f32 %v2427_v21, %v2139_v4  ;;  %v2097_v32 = vpop.xlane.xlu2 %2096  ;;  %v2118_v19 = vpop.xlane.xlu1 %2117 }
 0x59f   : > { %v2124_v43 = vmul.f32 0.00390625, %v2118_v19  ;;  %v3184_v56 = vmul.f32 0.00390625, %v2097_v32  ;;  %v2187_v32 = vld [vmem:[%s3240_s10 + $0x8] sm:$0xff] }
 0x5a0   : > { %v2141_v24 = vmul.f32 0.5, %v2140_v26 }
 0x5a1   : > { %v2132_v27 = vsub.f32 %v2124_v43, %v2128_v23  ;;  %v2129_v61 = vmul.f32 %v3184_v56, %v3184_v56 }
 0x5a2   : > { %v2142_v2 = vsub.f32 1.5, %v2141_v24 }
 0x5a3   : > { %v2429_v46 = vpop.eup %2428  ;;  %v2136_v20 = vadd.f32 1e-05, %v2132_v27 }
 0x5a4   : > { %v2149_v34 = vmul.f32 %v2429_v46, %v2135_v54  ;;  %v2143_v44 = vmul.f32 %v2427_v21, %v2142_v2  ;;  %vm2155_vm4 = vweird.f32 %v2429_v46  ;;  %v2189_v54 = vld [vmem:[%s3240_s10 + $0x18] sm:$0xff] }
 0x5a5   : > { %2430 = vrsqrt.f32 %v2136_v20  ;;  %vm2156_vm6 = vmor %vm2154_vm5, %vm2155_vm4  ;;  %vm2164_vm8 = vweird.f32 %v2136_v20 }
 0x5a6   : > { %v2150_v33 = vmul.f32 %v2429_v46, %v2149_v34  ;;  %v2121_v5 = vpop.xlane.xlu2 %2120  ;;  %v2147_v40 = vsel %vm2146_vm3, %v2427_v21, %v2143_v44 }
 0x5a7   : > { %v2125_v0 = vmul.f32 0.00390625, %v2121_v5  ;;  %v2182_v35 = vmul.f32 %v2178_v17, %v2147_v40 }
 0x5a8   : > { %v2151_v45 = vmul.f32 0.5, %v2150_v33 }
 0x5a9   : > { %v2133_v49 = vsub.f32 %v2125_v0, %v2129_v61  ;;  %2200 = vperm.xlu0 %2383, %v2182_v35   ;;  %v2190_v51 = vmul.f32 %v2182_v35, %v2098_v37  ;;  %v2180_v37 = vld [vmem:[%s3239_s9 + $0x10] sm:$0xff] }
 0x5aa   : > { %v2152_v50 = vsub.f32 1.5, %v2151_v45 }
 0x5ab   : > { %v2431_v53 = vpop.eup %2430  ;;  %v2137_v57 = vadd.f32 1e-05, %v2133_v49  ;;  %v2194_v55 = vsub.f32 %v2186_v58, %v2190_v51 }
 0x5ac   : > { %v2159_v25 = vmul.f32 %v2431_v53, %v2136_v20  ;;  %v2153_v63 = vmul.f32 %v2429_v46, %v2152_v50  ;;  %vm2165_vm7 = vweird.f32 %v2431_v53 }
 0x5ad   : > { %2432 = vrsqrt.f32 %v2137_v57  ;;  %2228 = vperm.xlu1 %2384, %v2194_v55   ;;  %vm2166_vm9 = vmor %vm2164_vm8, %vm2165_vm7  ;;  %vm2174_vm11 = vweird.f32 %v2137_v57 }
 0x5ae   : > { %v2160_v10 = vmul.f32 %v2431_v53, %v2159_v25  ;;  %v2157_v13 = vsel %vm2156_vm6, %v2429_v46, %v2153_v63 }
 0x5af   : > { %v2183_v52 = vmul.f32 %v2179_v8, %v2157_v13 }
 0x5b0   : > { %v2161_v11 = vmul.f32 0.5, %v2160_v10 }
 0x5b1   : > { %v2191_v26 = vmul.f32 %v2183_v52, %v3176_v38 }
 0x5b2   : > { %v2162_v3 = vsub.f32 1.5, %v2161_v11 }
 0x5b3   : > { %v2433_v15 = vpop.eup %2432  ;;  %v2195_v19 = vsub.f32 %v2187_v32, %v2191_v26 }
 0x5b4   : > { %v2169_v62 = vmul.f32 %v2433_v15, %v2137_v57  ;;  %v2163_v9 = vmul.f32 %v2431_v53, %v2162_v3  ;;  %vm2175_vm10 = vweird.f32 %v2433_v15 }
 0x5b5   : > { %2205 = vperm.xlu1 %2384, %v2183_v52   ;;  %vm2176_vm12 = vmor %vm2174_vm11, %vm2175_vm10 }
 0x5b6   : > { %v2170_v16 = vmul.f32 %v2433_v15, %v2169_v62  ;;  %v2167_v36 = vsel %vm2166_vm9, %v2431_v53, %v2163_v9 }
 0x5b7   : > { %v2184_v6 = vmul.f32 %v2180_v37, %v2167_v36 }
 0x5b8   : > { %v2171_v41 = vmul.f32 0.5, %v2170_v16 }
 0x5b9   : > { %2210 = vperm.xlu2 %2385, %v2184_v6   ;;  %v2192_v48 = vmul.f32 %v2184_v6, %v3180_v18 }
 0x5ba   : > { %v2172_v14 = vsub.f32 1.5, %v2171_v41 }
 0x5bb   : > { %v2196_v21 = vsub.f32 %v2188_v28, %v2192_v48 }
 0x5bc   : > { %v2173_v22 = vmul.f32 %v2433_v15, %v2172_v14 }
 0x5be   : > { %v2177_v59 = vsel %vm2176_vm12, %v2433_v15, %v2173_v22 }
 0x5bf   : > { %v2185_v1 = vmul.f32 %v2181_v39, %v2177_v59 }
 0x5c1   : > { %2215 = vperm.xlu0 %2383, %v2185_v1   ;;  %2238 = vperm.xlu2 %2385, %v2196_v21   ;;  %v2193_v18 = vmul.f32 %v2185_v1, %v3184_v56 }
 0x5c3   : > { %v2197_v4 = vsub.f32 %v2189_v54, %v2193_v18 }
 0x5c5   : > { %2243 = vperm.xlu1 %2384, %v2197_v4  }
 0x5c9   : > { %2233 = vperm.xlu0 %2383, %v2195_v19  }
 0x613   : > { %v2211_v23 = vpop.permute.xlu2 %2210 }
 0x614   : > { %v2222_v43 = vmul.f32 %v2211_v23, %v3154_v42  ;;  %v2223_v24 = vmul.f32 %v2211_v23, %v3156_v7 }
 0x61b   : > { %v2201_v27 = vpop.permute.xlu0 %2200  ;;  %v2239_v2 = vpop.permute.xlu2 %2238 }
 0x61c   : > { %v2250_v38 = vadd.f32 %v2239_v2, %v2222_v43  ;;  %v2251_v46 = vadd.f32 %v2239_v2, %v2223_v24  ;;  %v2218_v56 = vmul.f32 %v2201_v27, %v3136_v31  ;;  %v2219_v20 = vmul.f32 %v2201_v27, %v3138_v29 }
 0x61e   : > { %2258 = vst [vmem:[%s386_s24 + $0x20] sm:$0xff] %v2250_v38 }
 0x61f   : > { %2259 = vst [vmem:[%s386_s24 + $0x28] sm:$0xff] %v2251_v46  ;;  %v2229_v34 = vpop.permute.xlu1 %2228 }
 0x620   : > { %v2246_v44 = vadd.f32 %v2229_v34, %v2218_v56  ;;  %v2247_v17 = vadd.f32 %v2229_v34, %v2219_v20 }
 0x622   : > { %2254 = vst [vmem:[%s386_s24] sm:$0xff] %v2246_v44 }
 0x623   : > { %2255 = vst [vmem:[%s386_s24 + $0x8] sm:$0xff] %v2247_v17 }
 0x627   : > { %v2206_v42 = vpop.permute.xlu1 %2205 }
 0x628   : > { %v2220_v31 = vmul.f32 %v2206_v42, %v3144_v30  ;;  %v2221_v29 = vmul.f32 %v2206_v42, %v3146_v12 }
 0x633   : > { %v2216_v7 = vpop.permute.xlu0 %2215 }
 0x634   : > { %v2224_v33 = vmul.f32 %v2216_v7, %v3164_v47  ;;  %v2225_v5 = vmul.f32 %v2216_v7, %v3166_v60 }
 0x637   : > { %v2244_v40 = vpop.permute.xlu1 %2243 }
 0x638   : > { %v2252_v61 = vadd.f32 %v2244_v40, %v2224_v33  ;;  %v2253_v0 = vadd.f32 %v2244_v40, %v2225_v5 }
 0x63a   : > { %2260 = vst [vmem:[%s386_s24 + $0x30] sm:$0xff] %v2252_v61 }
 0x63b   : > { %2261 = vst [vmem:[%s386_s24 + $0x38] sm:$0xff] %v2253_v0  ;;  %v2234_v35 = vpop.permute.xlu0 %2233 }
 0x63c   : > { %v2248_v45 = vadd.f32 %v2234_v35, %v2220_v31  ;;  %v2249_v58 = vadd.f32 %v2234_v35, %v2221_v29 }
 0x63e   : > { %2256 = vst [vmem:[%s386_s24 + $0x10] sm:$0xff] %v2248_v45 }
 0x63f   : > { %2257 = vst [vmem:[%s386_s24 + $0x18] sm:$0xff] %v2249_v58 }
 0x640 PF: > { %s21_s17 = sadd.s32 1, %s2440_s17  }
 0x641   : > { %p18_p4 = scmp.ge.s32.totalorder %s21_s17, 4  }
 0x643   :  { %20 = sbr.rel (!%p18_p4) target bundleno = 1 (0x1), region = 103 }

</bundles_post_ra>
